<compile_context>
chip_gen: v5e
topology: v5e:2x2
jax: 0.10.0
libtpu: 0.0.40
codegen_flags: <defaults>
</compile_context>

<pallas_src>
import math
import numpy as np
import jax
import jax.numpy as jnp
from jax.experimental import pallas as pl
from jax.experimental.pallas import tpu as pltpu

TM_TARGET = 1024                 # target im2col rows (output positions) per grid step
VMEM_BUDGET = 24 * 1024 * 1024   # per-step tile budget (conservative for v7x's 64 MiB)


def _round_up(v, m):
    return ((v + m - 1) // m) * m


def _cdiv(a, b):
    return -(-a // b)


def _ntuple3(v):
    if isinstance(v, (tuple, list)):
        return tuple(v)
    return (v, v, v)


def _make_gemm_kernel(K, tk, need_mask):
    """GEMM kernel: out[i] = bias + sum_k patches[i,k] @ w[k].  out is f32, resident
    across the K grid axis, so it doubles as the accumulator (no scratch)."""

    def kernel(patches_ref, w_ref, b_ref, out_ref):
        # patches_ref: (TM, tk)       bf16 im2col rows (boundary blocks may hold garbage)
        # w_ref:       (tk, C_out_p)  bf16 pre-permuted, pre-transposed, zero-padded weight
        # b_ref:       (1, C_out_p)   f32 pre-permuted bias row
        # out_ref:     (TM, C_out_p)  f32 output block, resident across the K axis
        k = pl.program_id(1)

        @pl.when(k == 0)
        def _init():
            out_ref[...] = jnp.broadcast_to(b_ref[...], out_ref.shape)

        p = patches_ref[...]
        if need_mask:
            # Zero the out-of-bounds K lanes of the (partial) patch block so garbage
            # (possibly NaN) can never leak through the dot.  Static no-op otherwise.
            col = jax.lax.broadcasted_iota(jnp.int32, (1, p.shape[1]), 1) + k * tk
            p = jnp.where(col < K, p, jnp.zeros_like(p))

        out_ref[...] += jnp.dot(p, w_ref[...], preferred_element_type=jnp.float32)

    return kernel


def _choose_tiles(M, K, c_out_p, tm_target, budget):
    """Pick (tm, tk).  Prefer one K tile (weight block index constant -> never re-DMAed);
    shrink tk, then tm, until the double-buffered working set fits the budget."""
    tm = min(tm_target, _round_up(M, 8))
    tk = _round_up(K, 128)

    def vmem_bytes(tm_, tk_):
        return (2 * tm_ * tk_ * 2           # patches tile, bf16, double-buffered
                + 2 * tk_ * c_out_p * 2     # weight tile, bf16, double-buffered
                + 2 * tm_ * c_out_p * 4)    # f32 output tile (resident accumulator)

    while vmem_bytes(tm, tk) > budget and tk > 256:
        tk = _round_up(max(tk // 2, 128), 128)
    while vmem_bytes(tm, tk) > budget and tm > 128:
        tm = _round_up(max(tm // 2, 8), 8)
    return tm, tk


def oconv3d_forward(x, weight, bias, permutation, stride, padding, dilation, groups,
                    tm_target=TM_TARGET, vmem_budget_bytes=VMEM_BUDGET):
    """Pallas implementation of oConv3d.forward: conv3d with P-permuted weight/bias."""
    assert groups == 1  # TODO(synk): grouped conv (block-diagonal GEMM) not implemented
    N, C_in, D, H, W = x.shape
    C_out, _, kD, kH, kW = weight.shape
    stride, padding, dilation = _ntuple3(stride), _ntuple3(padding), _ntuple3(dilation)

    # Fold permutation + bias into the weight ONCE, outside the hot loop (tiny matmuls):
    #   out = patches @ (P @ W_flat)^T + P @ b
    w_perm = jnp.dot(permutation, weight.reshape(C_out, -1))            # (C_out, K) f32
    b_vec = bias if bias is not None else jnp.zeros((C_out,), jnp.float32)
    b_perm = jnp.dot(permutation, b_vec.astype(jnp.float32))            # (C_out,)   f32

    # im2col in XLA, directly in bf16 and channels-last patch order; feature index is
    # c*(kD*kH*kW) + kd*kH*kW + kh*kW + kw, matching weight.reshape(C_out, -1).
    # TODO(synk): fuse im2col into the Pallas pipeline (halo'd manual DMA).
    patches = jax.lax.conv_general_dilated_patches(
        x.astype(jnp.bfloat16),
        filter_shape=(kD, kH, kW),
        window_strides=stride,
        padding=[(p, p) for p in padding],
        rhs_dilation=dilation,
        dimension_numbers=('NCDHW', 'OIDHW', 'NDHWC'))
    _, Do, Ho, Wo, K = patches.shape
    M = N * Do * Ho * Wo
    patches = patches.reshape(M, K)          # bf16, NOT padded (no extra HBM copy)

    # Lane-dense N padding; 256 multiples when C_out is large (v6e/v7x 256-wide MXU).
    C_out_p = _round_up(C_out, 128) if C_out <= 128 else _round_up(C_out, 256)

    tm, tk = _choose_tiles(M, K, C_out_p, tm_target, vmem_budget_bytes)
    n_k = _cdiv(K, tk)
    k_pad = n_k * tk
    need_mask = (K % tk) != 0

    # Only the (small) weight/bias get padded; padded K rows are explicit zeros.
    w_t = jnp.pad(w_perm.T.astype(jnp.bfloat16),
                  ((0, k_pad - K), (0, C_out_p - C_out)))                # (k_pad, C_out_p)
    b_row = jnp.pad(b_perm, (0, C_out_p - C_out)).reshape(1, C_out_p)    # (1, C_out_p) f32

    grid = (_cdiv(M, tm), n_k)

    out_flat = pl.pallas_call(
        _make_gemm_kernel(K, tk, need_mask),
        out_shape=jax.ShapeDtypeStruct((M, C_out_p), jnp.float32),
        grid=grid,
        in_specs=[
            pl.BlockSpec((tm, tk), lambda i, k: (i, k)),
            pl.BlockSpec((tk, C_out_p), lambda i, k: (k, 0)),
            pl.BlockSpec((1, C_out_p), lambda i, k: (0, 0)),
        ],
        out_specs=pl.BlockSpec((tm, C_out_p), lambda i, k: (i, 0)),
        compiler_params=pltpu.CompilerParams(
            dimension_semantics=("parallel", "arbitrary"),
            vmem_limit_bytes=48 * 1024 * 1024),
        cost_estimate=pl.CostEstimate(
            flops=2 * M * K * C_out_p,
            transcendentals=0,
            bytes_accessed=2 * M * K + 2 * k_pad * C_out_p + 4 * M * C_out_p),
    )(patches, w_t, b_row)

    out = out_flat[:, :C_out].reshape(N, Do, Ho, Wo, C_out)
    return out.transpose(0, 4, 1, 2, 3)  # back to NCDHW (PyTorch layout)


def _reference(x, weight, bias, permutation, stride, padding, dilation, groups):
    """XLA reference: conv3d with explicitly permuted weight/bias (f32, HIGHEST)."""
    w_perm = jnp.einsum('ao,oidhw->aidhw', permutation, weight)
    out = jax.lax.conv_general_dilated(
        x, w_perm,
        window_strides=_ntuple3(stride),
        padding=[(p, p) for p in _ntuple3(padding)],
        rhs_dilation=_ntuple3(dilation),
        dimension_numbers=('NCDHW', 'OIDHW', 'NCDHW'),
        feature_group_count=groups,
        precision=jax.lax.Precision.HIGHEST)
    if bias is not None:
        out = out + (permutation @ bias)[None, :, None, None, None]
    return out


if __name__ == "__main__":
    key = jax.random.PRNGKey(0)

    def make_case(case_key, n, c_in, c_out, spatial, ksize, stride, padding, dilation,
                  use_bias):
        ksize = _ntuple3(ksize)
        spatial = _ntuple3(spatial)
        k_w, k_b, k_x, k_p = jax.random.split(case_key, 4)
        # Mirrors reset_parameters(): kaiming_uniform_(a=sqrt(5)) -> bound = 1/sqrt(fan_in)
        fan_in = c_in * ksize[0] * ksize[1] * ksize[2]
        bound = 1.0 / math.sqrt(fan_in)
        weight = jax.random.uniform(k_w, (c_out, c_in) + ksize,
                                    minval=-bound, maxval=bound, dtype=jnp.float32)
        bias = (jax.random.uniform(k_b, (c_out,), minval=-bound, maxval=bound,
                                   dtype=jnp.float32) if use_bias else None)
        x = jax.random.normal(k_x, (n, c_in) + spatial, dtype=jnp.float32)
        perm_idx = jax.random.permutation(k_p, c_out)
        permutation = jnp.eye(c_out, dtype=jnp.float32)[perm_idx]     # (C_out, C_out)
        return x, weight, bias, permutation, stride, padding, dilation

    k1, k2, k3 = jax.random.split(key, 3)
    cases = [
        # Module demo config: in=4, out=8, k=3, stride=1, pad=1, bias=True.
        make_case(k1, 2, 4, 8, 8, 3, 1, 1, 1, True),
        # Larger K (80*27 = 2160): resident-weight single-K-tile path, stride=2, no bias.
        make_case(k2, 1, 80, 16, 5, 3, 2, 1, 1, False),
        # Asymmetric kernel/stride/padding/dilation: guards the im2col K-index layout.
        make_case(k3, 1, 3, 5, (6, 7, 9), (2, 3, 1), (1, 2, 1), (0, 1, 0), (1, 1, 2), True),
    ]

    # bf16 GEMM operands (f32 accumulation) vs the f32/HIGHEST reference -> loose tol.
    TOL = dict(rtol=3e-2, atol=3e-2)

    for x, weight, bias, permutation, stride, padding, dilation in cases:
        out = oconv3d_forward(x, weight, bias, permutation, stride, padding, dilation, 1)
        out = jax.block_until_ready(out)
        ref = _reference(x, weight, bias, permutation, stride, padding, dilation, 1)
        np.testing.assert_allclose(np.asarray(out), np.asarray(ref), **TOL)

    # Force the multi-K-tile accumulation + tail-mask path with a tiny tile budget.
    x, weight, bias, permutation, stride, padding, dilation = cases[1]
    out = oconv3d_forward(x, weight, bias, permutation, stride, padding, dilation, 1,
                          vmem_budget_bytes=300_000)
    out = jax.block_until_ready(out)
    ref = _reference(x, weight, bias, permutation, stride, padding, dilation, 1)
    np.testing.assert_allclose(np.asarray(out), np.asarray(ref), **TOL)

    print("KERNEL_OK")
</pallas_src>

<mosaic_0001>
module attributes {stable_mosaic.version = 11 : i64} {
  func.func @kernel(%arg0: i32, %arg1: i32, %arg2: memref<1024x128xbf16, #tpu.memory_space<vmem>>, %arg3: memref<128x128xbf16, #tpu.memory_space<vmem>>, %arg4: memref<1x128xf32, #tpu.memory_space<vmem>>, %arg5: memref<1024x128xf32, #tpu.memory_space<vmem>>) attributes {dimension_semantics = [#tpu.dimension_semantics<parallel>, #tpu.dimension_semantics<arbitrary>], iteration_bounds = array<i64: 1, 1>, scalar_prefetch = 0 : i64, scratch_operands = 0 : i64, tpu.core_type = #tpu.core_type<tc>, window_params = [{transform_indices = @transform_0, window_bounds = array<i64: 1024, 128>}, {transform_indices = @transform_1, window_bounds = array<i64: 128, 128>}, {pipeline_mode = #tpu.pipeline_mode<synchronous>, transform_indices = @transform_2, window_bounds = array<i64: 1, 128>}, {transform_indices = @transform_3, window_bounds = array<i64: 1024, 128>}]} {
    %c0_i32 = arith.constant 0 : i32
    %0 = arith.cmpi eq, %arg1, %c0_i32 : i32
    %1 = arith.extui %0 : i1 to i32
    %c0_i32_0 = arith.constant 0 : i32
    %2 = arith.cmpi ne, %1, %c0_i32_0 : i32
    scf.if %2 {
      %c0_9 = arith.constant 0 : index
      %c0_10 = arith.constant 0 : index
      %19 = vector.load %arg4[%c0_9, %c0_10] : memref<1x128xf32, #tpu.memory_space<vmem>>, vector<1x128xf32>
      %20 = vector.shape_cast %19 : vector<1x128xf32> to vector<1x128xf32>
      %21 = vector.broadcast %20 : vector<1x128xf32> to vector<1024x128xf32>
      %c0_11 = arith.constant 0 : index
      %c0_12 = arith.constant 0 : index
      %22 = vector.load %arg5[%c0_11, %c0_12] : memref<1024x128xf32, #tpu.memory_space<vmem>>, vector<1024x128xf32>
      tpu.vector_store %arg5[%c0_11, %c0_12], %21 {strides = array<i32>} : memref<1024x128xf32, #tpu.memory_space<vmem>>, vector<1024x128xf32>,
    } else {
    }
    %c0 = arith.constant 0 : index
    %c0_1 = arith.constant 0 : index
    %3 = vector.load %arg2[%c0, %c0_1] : memref<1024x128xbf16, #tpu.memory_space<vmem>>, vector<1024x128xbf16>
    %4 = tpu.iota {dimensions = array<i32: 1>} : vector<1x128xi32>
    %c128_i32 = arith.constant 128 : i32
    %5 = arith.muli %arg1, %c128_i32 : i32
    %6 = vector.broadcast %5 : i32 to vector<1x128xi32>
    %7 = arith.addi %4, %6 : vector<1x128xi32>
    %c108_i32 = arith.constant 108 : i32
    %8 = vector.broadcast %c108_i32 : i32 to vector<1x128xi32>
    %9 = arith.cmpi slt, %7, %8 : vector<1x128xi32>
    %cst = arith.constant 0.000000e+00 : bf16
    %10 = vector.broadcast %cst : bf16 to vector<1024x128xbf16>
    %11 = vector.shape_cast %9 : vector<1x128xi1> to vector<1x128xi1>
    %12 = vector.broadcast %11 : vector<1x128xi1> to vector<1024x128xi1>
    %13 = arith.select %12, %3, %10 : vector<1024x128xi1>, vector<1024x128xbf16>
    %c0_2 = arith.constant 0 : index
    %c0_3 = arith.constant 0 : index
    %14 = vector.load %arg5[%c0_2, %c0_3] : memref<1024x128xf32, #tpu.memory_space<vmem>>, vector<1024x128xf32>
    %c0_4 = arith.constant 0 : index
    %c0_5 = arith.constant 0 : index
    %15 = vector.load %arg3[%c0_4, %c0_5] : memref<128x128xbf16, #tpu.memory_space<vmem>>, vector<128x128xbf16>
    %cst_6 = arith.constant dense<0.000000e+00> : vector<1024x128xf32>
    %16 = tpu.matmul %13, %15, %cst_6 {dimension_numbers = #tpu.dot_dimension_numbers<[1], [0], [0], [1], [0, 0, 1, 1], [], []>} : vector<1024x128xbf16>, vector<128x128xbf16>, vector<1024x128xf32> -> vector<1024x128xf32>
    %17 = arith.addf %14, %16 : vector<1024x128xf32>
    %c0_7 = arith.constant 0 : index
    %c0_8 = arith.constant 0 : index
    %18 = vector.load %arg5[%c0_7, %c0_8] : memref<1024x128xf32, #tpu.memory_space<vmem>>, vector<1024x128xf32>
    tpu.vector_store %arg5[%c0_7, %c0_8], %17 {strides = array<i32>} : memref<1024x128xf32, #tpu.memory_space<vmem>>, vector<1024x128xf32>,
    return
  }
  func.func @transform_0(%arg0: i32, %arg1: i32) -> (i32, i32) {
    %c0_i32 = arith.constant 0 : i32
    return %arg0, %arg1 : i32, i32
  }
  func.func @transform_1(%arg0: i32, %arg1: i32) -> (i32, i32) {
    %c0_i32 = arith.constant 0 : i32
    %c0_i32_0 = arith.constant 0 : i32
    return %arg1, %c0_i32 : i32, i32
  }
  func.func @transform_2(%arg0: i32, %arg1: i32) -> (i32, i32) {
    %c0_i32 = arith.constant 0 : i32
    %c0_i32_0 = arith.constant 0 : i32
    %c0_i32_1 = arith.constant 0 : i32
    return %c0_i32, %c0_i32_0 : i32, i32
  }
  func.func @transform_3(%arg0: i32, %arg1: i32) -> (i32, i32) {
    %c0_i32 = arith.constant 0 : i32
    %c0_i32_0 = arith.constant 0 : i32
    return %arg0, %c0_i32 : i32, i32
  }
}

</mosaic_0001>

<bundles_post_ra>
// kernel: tpu_custom_call.1
= control target key start
LH: loop header
LB: loop body
LE: loop exit
PB: predicated region body
PF: predicated region fallthrough
CT: control target
= control target key end

     0   :  { %s2546_s0 = inlined_call_operand.vmem [shape: bf16[1024,108], index: 0, kind: input, shape index: {}]   ;;  %s2547_s1 = inlined_call_operand.vmem [shape: bf16[128,128], index: 1, kind: input, shape index: {}]   ;;  %s2548_s2 = inlined_call_operand.vmem [shape: f32[1,128], index: 2, kind: input, shape index: {}]   ;;  %s2549_s3 = inlined_call_operand.hbm [shape: f32[1024,128], index: 3, kind: output, shape index: {}]  }
   0x1   :  { %v1635_v0 = vld [vmem:[%s2547_s1 + $0x38] sm:$0xff]  ;;  %v1634_v1 = vld [vmem:[%s2547_s1 + $0x30] sm:$0xff]  ;;  %v1633_v2 = vld [vmem:[%s2547_s1 + $0x28] sm:$0xff] }
   0x2   :  { %993 = vmatpush.bf16.msra.mxu0 %v1635_v0  ;;  %1636 = vmatpush.bf16.msra.mxu1 %v1635_v0 }
   0x3   :  { %1637 = vmatpush.bf16.msra.mxu2 %v1635_v0  ;;  %1638 = vmatpush.bf16.msra.mxu3 %v1635_v0 }
   0x6   :  { %994 = vmatpush.bf16.msra.mxu0 %v1634_v1  ;;  %1639 = vmatpush.bf16.msra.mxu1 %v1634_v1 }
   0x7   :  { %1640 = vmatpush.bf16.msra.mxu2 %v1634_v1  ;;  %1641 = vmatpush.bf16.msra.mxu3 %v1634_v1 }
   0x8   :  { %8 = vsyncpa [#allocation3], 0  ;;  %v280_v3 = vlaneseq  ;;  %v1632_v4 = vld [vmem:[%s2547_s1 + $0x20] sm:$0xff]  ;;  %v1631_v6 = vld [vmem:[%s2547_s1 + $0x18] sm:$0xff]  ;;  %s1584_s4 = sshll.u32 %s2549_s3, 4  ;;  %s1692_s5 = smov 128   ;;  %s1585_s4 = int_to_ptr.hbm [resolvable:$true] %s1584_s4 }
   0x9   :  { %v1630_v7 = vld [vmem:[%s2547_s1 + $0x10] sm:$0xff]  ;;  %v152_v8 = vld [vmem:[%s2546_s0] sm:$0xf]  ;;  %v153_v9 = vld [vmem:[%s2546_s0 + $0x4] sm:$0xf]  ;;  %s1693_s6 = smov 8  }
   0xa   :  { %995 = vmatpush.bf16.msra.mxu0 %v1633_v2  ;;  %1642 = vmatpush.bf16.msra.mxu1 %v1633_v2  ;;  %v281_v5 = vand.u32 127, %v280_v3  ;;  %v184_v10 = vld [vmem:[%s2546_s0 + $0x80] sm:$0xf]  ;;  %v185_v12 = vld [vmem:[%s2546_s0 + $0x84] sm:$0xf]  ;;  %v1629_v17 = vld [vmem:[%s2547_s1 + $0x8] sm:$0xff] }
   0xb   :  { %1643 = vmatpush.bf16.msra.mxu2 %v1633_v2  ;;  %1644 = vmatpush.bf16.msra.mxu3 %v1633_v2  ;;  %v216_v13 = vld [vmem:[%s2546_s0 + $0x100] sm:$0xf]  ;;  %v217_v14 = vld [vmem:[%s2546_s0 + $0x104] sm:$0xf]  ;;  %v154_v39 = vld [vmem:[%s2546_s0 + $0x8] sm:$0xf] }
   0xc   :  { %vm285_vm0 = vcmp.lt.s32.totalorder %v281_v5, 108  ;;  %v248_v15 = vld [vmem:[%s2546_s0 + $0x180] sm:$0xf]  ;;  %v249_v16 = vld [vmem:[%s2546_s0 + $0x184] sm:$0xf] }
   0xd   :  { %vm1741_vm1 = vmpackc.low %vm285_vm0, %vm285_vm0  ;;  %v1628_v30 = vld [vmem:[%s2547_s1] sm:$0xff]  ;;  %v155_v40 = vld [vmem:[%s2546_s0 + $0xc] sm:$0xf] }
   0xe   :  { %996 = vmatpush.bf16.msra.mxu0 %v1632_v4  ;;  %1645 = vmatpush.bf16.msra.mxu1 %v1632_v4  ;;  %v289_v18 = vsel %vm1741_vm1, %v152_v8, 0  ;;  %v290_v19 = vsel %vm1741_vm1, %v153_v9, 0  ;;  %v321_v20 = vsel %vm1741_vm1, %v184_v10, 0  ;;  %v322_v21 = vsel %vm1741_vm1, %v185_v12, 0  ;;  %v186_v41 = vld [vmem:[%s2546_s0 + $0x88] sm:$0xf] }
   0xf   :  { %1646 = vmatpush.bf16.msra.mxu2 %v1632_v4  ;;  %1647 = vmatpush.bf16.msra.mxu3 %v1632_v4  ;;  %v353_v22 = vsel %vm1741_vm1, %v216_v13, 0  ;;  %v354_v23 = vsel %vm1741_vm1, %v217_v14, 0  ;;  %v385_v24 = vsel %vm1741_vm1, %v248_v15, 0  ;;  %v386_v25 = vsel %vm1741_vm1, %v249_v16, 0  ;;  %v187_v42 = vld [vmem:[%s2546_s0 + $0x8c] sm:$0xf] }
  0x10   :  { %v689_v26 = vunpack.c.l.b16 %v289_v18  ;;  %v690_v27 = vunpack.c.l.b16 %v290_v19  ;;  %v721_v28 = vunpack.c.l.b16 %v321_v20  ;;  %v722_v29 = vunpack.c.l.b16 %v322_v21  ;;  %v218_v43 = vld [vmem:[%s2546_s0 + $0x108] sm:$0xf]  ;;  %v219_v44 = vld [vmem:[%s2546_s0 + $0x10c] sm:$0xf]  ;;  %v156_v3 = vld [vmem:[%s2546_s0 + $0x10] sm:$0xf] }
  0x11   :  { %v753_v31 = vunpack.c.l.b16 %v353_v22  ;;  %v754_v32 = vunpack.c.l.b16 %v354_v23  ;;  %v785_v33 = vunpack.c.l.b16 %v385_v24  ;;  %v786_v34 = vunpack.c.l.b16 %v386_v25  ;;  %v250_v45 = vld [vmem:[%s2546_s0 + $0x188] sm:$0xf]  ;;  %v251_v46 = vld [vmem:[%s2546_s0 + $0x18c] sm:$0xf]  ;;  %v157_v4 = vld [vmem:[%s2546_s0 + $0x14] sm:$0xf] }
  0x12   :  { %997 = vmatpush.bf16.msra.mxu0 %v1631_v6  ;;  %1648 = vmatpush.bf16.msra.mxu1 %v1631_v6  ;;  %v817_v35 = vpack.c.b16 %v690_v27, %v689_v26  ;;  %v833_v36 = vpack.c.b16 %v722_v29, %v721_v28  ;;  %v291_v47 = vsel %vm1741_vm1, %v154_v39, 0  ;;  %v292_v48 = vsel %vm1741_vm1, %v155_v40, 0  ;;  %v188_v5 = vld [vmem:[%s2546_s0 + $0x90] sm:$0xf]  ;;  %v221_v8 = vld [vmem:[%s2546_s0 + $0x114] sm:$0xf] }
  0x13   :  { %1649 = vmatpush.bf16.msra.mxu2 %v1631_v6  ;;  %1650 = vmatpush.bf16.msra.mxu3 %v1631_v6  ;;  %v849_v37 = vpack.c.b16 %v754_v32, %v753_v31  ;;  %v865_v38 = vpack.c.b16 %v786_v34, %v785_v33  ;;  %v323_v49 = vsel %vm1741_vm1, %v186_v41, 0  ;;  %v324_v50 = vsel %vm1741_vm1, %v187_v42, 0  ;;  %v189_v6 = vld [vmem:[%s2546_s0 + $0x94] sm:$0xf]  ;;  %v252_v9 = vld [vmem:[%s2546_s0 + $0x190] sm:$0xf] }
  0x14   :  { %v355_v51 = vsel %vm1741_vm1, %v218_v43, 0  ;;  %v356_v52 = vsel %vm1741_vm1, %v219_v44, 0  ;;  %v387_v53 = vsel %vm1741_vm1, %v250_v45, 0  ;;  %v388_v54 = vsel %vm1741_vm1, %v251_v46, 0  ;;  %v253_v10 = vld [vmem:[%s2546_s0 + $0x194] sm:$0xf] }
  0x15   :  { %v691_v55 = vunpack.c.l.b16 %v291_v47  ;;  %v692_v56 = vunpack.c.l.b16 %v292_v48  ;;  %v723_v57 = vunpack.c.l.b16 %v323_v49  ;;  %v724_v58 = vunpack.c.l.b16 %v324_v50  ;;  %v158_v32 = vld [vmem:[%s2546_s0 + $0x18] sm:$0xf]  ;;  %v159_v33 = vld [vmem:[%s2546_s0 + $0x1c] sm:$0xf] }
  0x16   :  { %998 = vmatpush.bf16.msra.mxu0 %v1630_v7  ;;  %1651 = vmatpush.bf16.msra.mxu1 %v1630_v7  ;;  %v755_v59 = vunpack.c.l.b16 %v355_v51  ;;  %v756_v60 = vunpack.c.l.b16 %v356_v52  ;;  %v787_v61 = vunpack.c.l.b16 %v387_v53  ;;  %v788_v62 = vunpack.c.l.b16 %v388_v54  ;;  %v190_v34 = vld [vmem:[%s2546_s0 + $0x98] sm:$0xf]  ;;  %v255_v39 = vld [vmem:[%s2546_s0 + $0x19c] sm:$0xf] }
  0x17   :  { %1652 = vmatpush.bf16.msra.mxu2 %v1630_v7  ;;  %1653 = vmatpush.bf16.msra.mxu3 %v1630_v7  ;;  %v818_v63 = vpack.c.b16 %v692_v56, %v691_v55  ;;  %v834_v0 = vpack.c.b16 %v724_v58, %v723_v57  ;;  %v220_v7 = vld [vmem:[%s2546_s0 + $0x110] sm:$0xf]  ;;  %v293_v12 = vsel %vm1741_vm1, %v156_v3, 0  ;;  %v294_v13 = vsel %vm1741_vm1, %v157_v4, 0  ;;  %v257_v3 = vld [vmem:[%s2546_s0 + $0x1a4] sm:$0xf] }
  0x18   :  { %v850_v1 = vpack.c.b16 %v756_v60, %v755_v59  ;;  %v866_v2 = vpack.c.b16 %v788_v62, %v787_v61  ;;  %v325_v14 = vsel %vm1741_vm1, %v188_v5, 0  ;;  %v326_v15 = vsel %vm1741_vm1, %v189_v6, 0  ;;  %v160_v60 = vld [vmem:[%s2546_s0 + $0x20] sm:$0xf]  ;;  %v161_v61 = vld [vmem:[%s2546_s0 + $0x24] sm:$0xf] }
  0x19   :  { %v357_v16 = vsel %vm1741_vm1, %v220_v7, 0  ;;  %v389_v18 = vsel %vm1741_vm1, %v252_v9, 0  ;;  %v390_v19 = vsel %vm1741_vm1, %v253_v10, 0  ;;  %v693_v20 = vunpack.c.l.b16 %v293_v12  ;;  %v192_v62 = vld [vmem:[%s2546_s0 + $0xa0] sm:$0xf] }
  0x1a   :  { %999 = vmatpush.bf16.msra.mxu0 %v1629_v17  ;;  %1654 = vmatpush.bf16.msra.mxu1 %v1629_v17  ;;  %v694_v21 = vunpack.c.l.b16 %v294_v13  ;;  %v725_v22 = vunpack.c.l.b16 %v325_v14  ;;  %v726_v23 = vunpack.c.l.b16 %v326_v15  ;;  %v757_v24 = vunpack.c.l.b16 %v357_v16 }
  0x1b   :  { %1655 = vmatpush.bf16.msra.mxu2 %v1629_v17  ;;  %1656 = vmatpush.bf16.msra.mxu3 %v1629_v17  ;;  %v358_v17 = vsel %vm1741_vm1, %v221_v8, 0  ;;  %v789_v26 = vunpack.c.l.b16 %v389_v18  ;;  %v790_v27 = vunpack.c.l.b16 %v390_v19  ;;  %v295_v40 = vsel %vm1741_vm1, %v158_v32, 0  ;;  %v259_v32 = vld [vmem:[%s2546_s0 + $0x1ac] sm:$0xf] }
  0x1c   :  { %v758_v25 = vunpack.c.l.b16 %v358_v17  ;;  %v819_v28 = vpack.c.b16 %v694_v21, %v693_v20  ;;  %v835_v29 = vpack.c.b16 %v726_v23, %v725_v22  ;;  %v296_v41 = vsel %vm1741_vm1, %v159_v33, 0 }
  0x1d   :  { %v867_v31 = vpack.c.b16 %v790_v27, %v789_v26  ;;  %v327_v42 = vsel %vm1741_vm1, %v190_v34, 0  ;;  %v392_v47 = vsel %vm1741_vm1, %v255_v39, 0  ;;  %v695_v48 = vunpack.c.l.b16 %v295_v40  ;;  %v163_v26 = vld [vmem:[%s2546_s0 + $0x2c] sm:$0xf]  ;;  %v194_v27 = vld [vmem:[%s2546_s0 + $0xa8] sm:$0xf] }
  0x1e   :  { %1000 = vmatpush.bf16.msra.mxu0 %v1628_v30  ;;  %1657 = vmatpush.bf16.msra.mxu1 %v1628_v30  ;;  %v696_v49 = vunpack.c.l.b16 %v296_v41  ;;  %v727_v50 = vunpack.c.l.b16 %v327_v42  ;;  %v792_v55 = vunpack.c.l.b16 %v392_v47  ;;  %v297_v4 = vsel %vm1741_vm1, %v160_v60, 0  ;;  %v260_v60 = vld [vmem:[%s2546_s0 + $0x1b0] sm:$0xf] }
  0x1f   :  { %1658 = vmatpush.bf16.msra.mxu2 %v1628_v30  ;;  %1659 = vmatpush.bf16.msra.mxu3 %v1628_v30  ;;  %v851_v30 = vpack.c.b16 %v758_v25, %v757_v24  ;;  %v298_v5 = vsel %vm1741_vm1, %v161_v61, 0  ;;  %v329_v6 = vsel %vm1741_vm1, %v192_v62, 0  ;;  %v394_v12 = vsel %vm1741_vm1, %v257_v3, 0  ;;  %v162_v25 = vld [vmem:[%s2546_s0 + $0x28] sm:$0xf] }
  0x20   :  { %v820_v56 = vpack.c.b16 %v696_v49, %v695_v48  ;;  %v697_v13 = vunpack.c.l.b16 %v297_v4  ;;  %v698_v14 = vunpack.c.l.b16 %v298_v5  ;;  %v729_v15 = vunpack.c.l.b16 %v329_v6  ;;  %v261_v61 = vld [vmem:[%s2546_s0 + $0x1b4] sm:$0xf] }
  0x21   :  { %1001 = vmatmul.bf16.vlgmr.msra.gmra.mxu0 %v817_v35  ;;  %1081 = vmatmul.bf16.vlgmr.msra.gmra.mxu1 %v833_v36  ;;  %v191_v35 = vld [vmem:[%s2546_s0 + $0x9c] sm:$0xf]  ;;  %v222_v36 = vld [vmem:[%s2546_s0 + $0x118] sm:$0xf]  ;;  %v794_v20 = vunpack.c.l.b16 %v394_v12  ;;  %v299_v33 = vsel %vm1741_vm1, %v162_v25, 0  ;;  %v300_v34 = vsel %vm1741_vm1, %v163_v26, 0 }
  0x22   :  { %1161 = vmatmul.bf16.vlgmr.msra.gmra.mxu2 %v849_v37  ;;  %1241 = vmatmul.bf16.vlgmr.msra.gmra.mxu3 %v865_v38  ;;  %v223_v37 = vld [vmem:[%s2546_s0 + $0x11c] sm:$0xf]  ;;  %v254_v38 = vld [vmem:[%s2546_s0 + $0x198] sm:$0xf]  ;;  %v328_v43 = vsel %vm1741_vm1, %v191_v35, 0  ;;  %v359_v44 = vsel %vm1741_vm1, %v222_v36, 0  ;;  %v821_v21 = vpack.c.b16 %v698_v14, %v697_v13  ;;  %v699_v41 = vunpack.c.l.b16 %v299_v33 }
  0x23   :  { %v360_v45 = vsel %vm1741_vm1, %v223_v37, 0  ;;  %v391_v46 = vsel %vm1741_vm1, %v254_v38, 0  ;;  %v728_v51 = vunpack.c.l.b16 %v328_v43  ;;  %v759_v52 = vunpack.c.l.b16 %v359_v44  ;;  %v262_v25 = vld [vmem:[%s2546_s0 + $0x1b8] sm:$0xf]  ;;  %v263_v26 = vld [vmem:[%s2546_s0 + $0x1bc] sm:$0xf] }
  0x24   :  { %v760_v53 = vunpack.c.l.b16 %v360_v45  ;;  %v791_v54 = vunpack.c.l.b16 %v391_v46  ;;  %v331_v35 = vsel %vm1741_vm1, %v194_v27, 0  ;;  %v396_v40 = vsel %vm1741_vm1, %v259_v32, 0 }
  0x25   :  { %v836_v57 = vpack.c.b16 %v728_v51, %v727_v50  ;;  %v700_v42 = vunpack.c.l.b16 %v300_v34  ;;  %v731_v43 = vunpack.c.l.b16 %v331_v35  ;;  %v796_v48 = vunpack.c.l.b16 %v396_v40 }
  0x26   :  { %v852_v58 = vpack.c.b16 %v760_v53, %v759_v52  ;;  %v868_v59 = vpack.c.b16 %v792_v55, %v791_v54  ;;  %v164_v53 = vld [vmem:[%s2546_s0 + $0x30] sm:$0xf]  ;;  %v165_v54 = vld [vmem:[%s2546_s0 + $0x34] sm:$0xf]  ;;  %v397_v4 = vsel %vm1741_vm1, %v260_v60, 0  ;;  %v398_v5 = vsel %vm1741_vm1, %v261_v61, 0 }
  0x27   :  { %v822_v49 = vpack.c.b16 %v700_v42, %v699_v41  ;;  %v196_v55 = vld [vmem:[%s2546_s0 + $0xb0] sm:$0xf]  ;;  %v301_v62 = vsel %vm1741_vm1, %v164_v53, 0  ;;  %v797_v13 = vunpack.c.l.b16 %v397_v4  ;;  %v798_v14 = vunpack.c.l.b16 %v398_v5 }
  0x28   :  { %v701_v6 = vunpack.c.l.b16 %v301_v62  ;;  %v399_v33 = vsel %vm1741_vm1, %v262_v25, 0  ;;  %v400_v34 = vsel %vm1741_vm1, %v263_v26, 0  ;;  %v203_v25 = vld [vmem:[%s2546_s0 + $0xcc] sm:$0xf]  ;;  %v234_v26 = vld [vmem:[%s2546_s0 + $0x148] sm:$0xf] }
  0x29   :  { %v799_v41 = vunpack.c.l.b16 %v399_v33  ;;  %v800_v42 = vunpack.c.l.b16 %v400_v34  ;;  %v371_v33 = vsel %vm1741_vm1, %v234_v26, 0  ;;  %v266_v34 = vld [vmem:[%s2546_s0 + $0x1c8] sm:$0xf] }
  0x31   :  { %1006 = vmatmul.bf16.gmra.mxu0 %v818_v63  ;;  %1086 = vmatmul.bf16.gmra.mxu1 %v834_v0  ;;  %v193_v63 = vld [vmem:[%s2546_s0 + $0xa4] sm:$0xf]  ;;  %v224_v0 = vld [vmem:[%s2546_s0 + $0x120] sm:$0xf] }
  0x32   :  { %1166 = vmatmul.bf16.gmra.mxu2 %v850_v1  ;;  %1246 = vmatmul.bf16.gmra.mxu3 %v866_v2  ;;  %v225_v1 = vld [vmem:[%s2546_s0 + $0x124] sm:$0xf]  ;;  %v256_v2 = vld [vmem:[%s2546_s0 + $0x1a0] sm:$0xf]  ;;  %v330_v7 = vsel %vm1741_vm1, %v193_v63, 0  ;;  %v361_v8 = vsel %vm1741_vm1, %v224_v0, 0 }
  0x33   :  { %v362_v9 = vsel %vm1741_vm1, %v225_v1, 0  ;;  %v393_v10 = vsel %vm1741_vm1, %v256_v2, 0  ;;  %v730_v16 = vunpack.c.l.b16 %v330_v7  ;;  %v761_v17 = vunpack.c.l.b16 %v361_v8 }
  0x34   :  { %v762_v18 = vunpack.c.l.b16 %v362_v9  ;;  %v793_v19 = vunpack.c.l.b16 %v393_v10  ;;  %v302_v63 = vsel %vm1741_vm1, %v165_v54, 0  ;;  %v333_v0 = vsel %vm1741_vm1, %v196_v55, 0  ;;  %v233_v55 = vld [vmem:[%s2546_s0 + $0x144] sm:$0xf] }
  0x35   :  { %v837_v22 = vpack.c.b16 %v730_v16, %v729_v15  ;;  %v702_v7 = vunpack.c.l.b16 %v302_v63  ;;  %v733_v8 = vunpack.c.l.b16 %v333_v0  ;;  %v370_v61 = vsel %vm1741_vm1, %v233_v55, 0  ;;  %v205_v55 = vld [vmem:[%s2546_s0 + $0xd4] sm:$0xf] }
  0x36   :  { %v853_v23 = vpack.c.b16 %v762_v18, %v761_v17  ;;  %v869_v24 = vpack.c.b16 %v794_v20, %v793_v19  ;;  %v871_v18 = vpack.c.b16 %v798_v14, %v797_v13  ;;  %v166_v19 = vld [vmem:[%s2546_s0 + $0x38] sm:$0xf]  ;;  %v167_v20 = vld [vmem:[%s2546_s0 + $0x3c] sm:$0xf]  ;;  %v770_v5 = vunpack.c.l.b16 %v370_v61 }
  0x37   :  { %v823_v15 = vpack.c.b16 %v702_v7, %v701_v6  ;;  %v303_v27 = vsel %vm1741_vm1, %v166_v19, 0 }
  0x38   :  { %v703_v35 = vunpack.c.l.b16 %v303_v27 }
  0x41   :  { %1011 = vmatmul.bf16.gmra.mxu0 %v819_v28  ;;  %1091 = vmatmul.bf16.gmra.mxu1 %v835_v29  ;;  %v195_v28 = vld [vmem:[%s2546_s0 + $0xac] sm:$0xf]  ;;  %v226_v29 = vld [vmem:[%s2546_s0 + $0x128] sm:$0xf] }
  0x42   :  { %1171 = vmatmul.bf16.gmra.mxu2 %v851_v30  ;;  %1251 = vmatmul.bf16.gmra.mxu3 %v867_v31  ;;  %v227_v30 = vld [vmem:[%s2546_s0 + $0x12c] sm:$0xf]  ;;  %v258_v31 = vld [vmem:[%s2546_s0 + $0x1a8] sm:$0xf]  ;;  %v332_v36 = vsel %vm1741_vm1, %v195_v28, 0  ;;  %v363_v37 = vsel %vm1741_vm1, %v226_v29, 0 }
  0x43   :  { %v364_v38 = vsel %vm1741_vm1, %v227_v30, 0  ;;  %v395_v39 = vsel %vm1741_vm1, %v258_v31, 0  ;;  %v732_v44 = vunpack.c.l.b16 %v332_v36  ;;  %v763_v45 = vunpack.c.l.b16 %v363_v37 }
  0x44   :  { %v764_v46 = vunpack.c.l.b16 %v364_v38  ;;  %v795_v47 = vunpack.c.l.b16 %v395_v39  ;;  %v304_v28 = vsel %vm1741_vm1, %v167_v20, 0 }
  0x45   :  { %v838_v50 = vpack.c.b16 %v732_v44, %v731_v43  ;;  %v704_v36 = vunpack.c.l.b16 %v304_v28  ;;  %v340_v28 = vsel %vm1741_vm1, %v203_v25, 0 }
  0x46   :  { %v854_v51 = vpack.c.b16 %v764_v46, %v763_v45  ;;  %v870_v52 = vpack.c.b16 %v796_v48, %v795_v47  ;;  %v872_v46 = vpack.c.b16 %v800_v42, %v799_v41  ;;  %v168_v47 = vld [vmem:[%s2546_s0 + $0x40] sm:$0xf]  ;;  %v169_v48 = vld [vmem:[%s2546_s0 + $0x44] sm:$0xf] }
  0x47   :  { %v824_v43 = vpack.c.b16 %v704_v36, %v703_v35  ;;  %v306_v53 = vsel %vm1741_vm1, %v169_v48, 0  ;;  %v267_v35 = vld [vmem:[%s2546_s0 + $0x1cc] sm:$0xf]  ;;  %v740_v36 = vunpack.c.l.b16 %v340_v28 }
  0x51   :  { %1016 = vmatmul.bf16.gmra.mxu0 %v820_v56  ;;  %1096 = vmatmul.bf16.gmra.mxu1 %v836_v57  ;;  %v1994_v56 = vld [vmem:[%s2548_s2] ss:$0 sm:$0xff]  ;;  %v197_v57 = vld [vmem:[%s2546_s0 + $0xb4] sm:$0xf] }
  0x52   :  { %1176 = vmatmul.bf16.gmra.mxu2 %v852_v58  ;;  %1256 = vmatmul.bf16.gmra.mxu3 %v868_v59  ;;  %v228_v58 = vld [vmem:[%s2546_s0 + $0x130] sm:$0xf]  ;;  %v229_v59 = vld [vmem:[%s2546_s0 + $0x134] sm:$0xf]  ;;  %37 = vst [vmem:[#allocation2 + $0x68] sm:$0xff] %v1994_v56  ;;  %v334_v1 = vsel %vm1741_vm1, %v197_v57, 0 }
  0x53   :  { %38 = vst [vmem:[#allocation2 + $0x70] sm:$0xff] %v1994_v56  ;;  %v365_v2 = vsel %vm1741_vm1, %v228_v58, 0  ;;  %v366_v3 = vsel %vm1741_vm1, %v229_v59, 0  ;;  %v734_v9 = vunpack.c.l.b16 %v334_v1  ;;  %v264_v58 = vld [vmem:[%s2546_s0 + $0x1c0] sm:$0xf]  ;;  %v706_v1 = vunpack.c.l.b16 %v306_v53 }
  0x54   :  { %39 = vst [vmem:[#allocation2 + $0x78] sm:$0xff] %v1994_v56  ;;  %v765_v10 = vunpack.c.l.b16 %v365_v2  ;;  %v766_v12 = vunpack.c.l.b16 %v366_v3  ;;  %v265_v59 = vld [vmem:[%s2546_s0 + $0x1c4] sm:$0xf]  ;;  %v401_v62 = vsel %vm1741_vm1, %v264_v58, 0  ;;  %v173_v53 = vld [vmem:[%s2546_s0 + $0x54] sm:$0xf] }
  0x55   :  { %40 = vst [vmem:[#allocation2 + $0x80] sm:$0xff] %v1994_v56  ;;  %v839_v16 = vpack.c.b16 %v734_v9, %v733_v8  ;;  %v402_v63 = vsel %vm1741_vm1, %v265_v59, 0  ;;  %v801_v6 = vunpack.c.l.b16 %v401_v62  ;;  %v237_v58 = vld [vmem:[%s2546_s0 + $0x154] sm:$0xf]  ;;  %v268_v59 = vld [vmem:[%s2546_s0 + $0x1d0] sm:$0xf] }
  0x56   :  { %41 = vst [vmem:[#allocation2 + $0x88] sm:$0xff] %v1994_v56  ;;  %v855_v17 = vpack.c.b16 %v766_v12, %v765_v10  ;;  %v802_v7 = vunpack.c.l.b16 %v402_v63 }
  0x57   :  { %42 = vst [vmem:[#allocation2 + $0x90] sm:$0xff] %v1994_v56 }
  0x58   :  { %43 = vst [vmem:[#allocation2 + $0x98] sm:$0xff] %v1994_v56  ;;  %v873_v14 = vpack.c.b16 %v802_v7, %v801_v6  ;;  %v374_v6 = vsel %vm1741_vm1, %v237_v58, 0  ;;  %v405_v7 = vsel %vm1741_vm1, %v268_v59, 0 }
  0x59   :  { %44 = vst [vmem:[#allocation2 + $0xa0] sm:$0xff] %v1994_v56 }
  0x5a   :  { %45 = vst [vmem:[#allocation2 + $0xa8] sm:$0xff] %v1994_v56 }
  0x5b   :  { %46 = vst [vmem:[#allocation2 + $0xb0] sm:$0xff] %v1994_v56 }
  0x5c   :  { %47 = vst [vmem:[#allocation2 + $0xb8] sm:$0xff] %v1994_v56 }
  0x5d   :  { %48 = vst [vmem:[#allocation2 + $0xc0] sm:$0xff] %v1994_v56 }
  0x5e   :  { %49 = vst [vmem:[#allocation2 + $0xc8] sm:$0xff] %v1994_v56 }
  0x5f   :  { %50 = vst [vmem:[#allocation2 + $0xd0] sm:$0xff] %v1994_v56 }
  0x60   :  { %51 = vst [vmem:[#allocation2 + $0xd8] sm:$0xff] %v1994_v56 }
  0x61   :  { %1021 = vmatmul.bf16.gmra.mxu0 %v821_v21  ;;  %1101 = vmatmul.bf16.gmra.mxu1 %v837_v22  ;;  %v198_v21 = vld [vmem:[%s2546_s0 + $0xb8] sm:$0xf]  ;;  %v199_v22 = vld [vmem:[%s2546_s0 + $0xbc] sm:$0xf]  ;;  %52 = vst [vmem:[#allocation2 + $0xe0] sm:$0xff] %v1994_v56 }
  0x62   :  { %1181 = vmatmul.bf16.gmra.mxu2 %v853_v23  ;;  %1261 = vmatmul.bf16.gmra.mxu3 %v869_v24  ;;  %v230_v23 = vld [vmem:[%s2546_s0 + $0x138] sm:$0xf]  ;;  %v231_v24 = vld [vmem:[%s2546_s0 + $0x13c] sm:$0xf]  ;;  %53 = vst [vmem:[#allocation2 + $0xe8] sm:$0xff] %v1994_v56  ;;  %v335_v29 = vsel %vm1741_vm1, %v198_v21, 0 }
  0x63   :  { %54 = vst [vmem:[#allocation2 + $0xf0] sm:$0xff] %v1994_v56  ;;  %v336_v30 = vsel %vm1741_vm1, %v199_v22, 0  ;;  %v367_v31 = vsel %vm1741_vm1, %v230_v23, 0  ;;  %v368_v32 = vsel %vm1741_vm1, %v231_v24, 0  ;;  %v735_v37 = vunpack.c.l.b16 %v335_v29  ;;  %v202_v22 = vld [vmem:[%s2546_s0 + $0xc8] sm:$0xf] }
  0x64   :  { %55 = vst [vmem:[#allocation2 + $0xf8] sm:$0xff] %v1994_v56  ;;  %v736_v38 = vunpack.c.l.b16 %v336_v30  ;;  %v767_v39 = vunpack.c.l.b16 %v367_v31  ;;  %v768_v40 = vunpack.c.l.b16 %v368_v32  ;;  %v339_v27 = vsel %vm1741_vm1, %v202_v22, 0  ;;  %v235_v29 = vld [vmem:[%s2546_s0 + $0x14c] sm:$0xf] }
  0x65   :  { %69 = vst [vmem:[#allocation2 + $0x168] sm:$0xff] %v1994_v56  ;;  %v739_v32 = vunpack.c.l.b16 %v339_v27 }
  0x66   :  { %70 = vst [vmem:[#allocation2 + $0x170] sm:$0xff] %v1994_v56  ;;  %v840_v44 = vpack.c.b16 %v736_v38, %v735_v37  ;;  %v856_v45 = vpack.c.b16 %v768_v40, %v767_v39  ;;  %v372_v37 = vsel %vm1741_vm1, %v235_v29, 0  ;;  %v403_v38 = vsel %vm1741_vm1, %v266_v34, 0 }
  0x67   :  { %71 = vst [vmem:[#allocation2 + $0x178] sm:$0xff] %v1994_v56  ;;  %v404_v39 = vsel %vm1741_vm1, %v267_v35, 0  ;;  %v771_v40 = vunpack.c.l.b16 %v371_v33  ;;  %v772_v41 = vunpack.c.l.b16 %v372_v37  ;;  %v803_v42 = vunpack.c.l.b16 %v403_v38  ;;  %v175_v35 = vld [vmem:[%s2546_s0 + $0x5c] sm:$0xf]  ;;  %v206_v37 = vld [vmem:[%s2546_s0 + $0xd8] sm:$0xf] }
  0x68   :  { %72 = vst [vmem:[#allocation2 + $0x180] sm:$0xff] %v1994_v56  ;;  %v207_v38 = vld [vmem:[%s2546_s0 + $0xdc] sm:$0xf] }
  0x69   :  { %73 = vst [vmem:[#allocation2 + $0x188] sm:$0xff] %v1994_v56 }
  0x6a   :  { %74 = vst [vmem:[#allocation2 + $0x190] sm:$0xff] %v1994_v56 }
  0x6b   :  { %75 = vst [vmem:[#allocation2 + $0x198] sm:$0xff] %v1994_v56 }
  0x6c   :  { %76 = vst [vmem:[#allocation2 + $0x1a0] sm:$0xff] %v1994_v56 }
  0x6d   :  { %77 = vst [vmem:[#allocation2 + $0x1a8] sm:$0xff] %v1994_v56 }
  0x6e   :  { %78 = vst [vmem:[#allocation2 + $0x1b0] sm:$0xff] %v1994_v56 }
  0x6f   :  { %79 = vst [vmem:[#allocation2 + $0x1b8] sm:$0xff] %v1994_v56 }
  0x70   :  { %80 = vst [vmem:[#allocation2 + $0x1c0] sm:$0xff] %v1994_v56 }
  0x71   :  { %1026 = vmatmul.bf16.gmra.mxu0 %v822_v49  ;;  %1106 = vmatmul.bf16.gmra.mxu1 %v838_v50  ;;  %81 = vst [vmem:[#allocation2 + $0x1c8] sm:$0xff] %v1994_v56  ;;  %v200_v49 = vld [vmem:[%s2546_s0 + $0xc0] sm:$0xf]  ;;  %v201_v50 = vld [vmem:[%s2546_s0 + $0xc4] sm:$0xf] }
  0x72   :  { %1186 = vmatmul.bf16.gmra.mxu2 %v854_v51  ;;  %1266 = vmatmul.bf16.gmra.mxu3 %v870_v52  ;;  %82 = vst [vmem:[#allocation2 + $0x1d0] sm:$0xff] %v1994_v56  ;;  %v232_v51 = vld [vmem:[%s2546_s0 + $0x140] sm:$0xf]  ;;  %v305_v52 = vsel %vm1741_vm1, %v168_v47, 0  ;;  %v337_v54 = vsel %vm1741_vm1, %v200_v49, 0  ;;  %v338_v57 = vsel %vm1741_vm1, %v201_v50, 0  ;;  %v842_v47 = vpack.c.b16 %v740_v36, %v739_v32 }
  0x73   :  { %83 = vst [vmem:[#allocation2 + $0x1d8] sm:$0xff] %v1994_v56  ;;  %v369_v60 = vsel %vm1741_vm1, %v232_v51, 0  ;;  %v705_v0 = vunpack.c.l.b16 %v305_v52  ;;  %v737_v2 = vunpack.c.l.b16 %v337_v54  ;;  %v738_v3 = vunpack.c.l.b16 %v338_v57  ;;  %v172_v52 = vld [vmem:[%s2546_s0 + $0x50] sm:$0xf] }
  0x74   :  { %84 = vst [vmem:[#allocation2 + $0x1e0] sm:$0xff] %v1994_v56  ;;  %v769_v4 = vunpack.c.l.b16 %v369_v60  ;;  %v858_v50 = vpack.c.b16 %v772_v41, %v771_v40  ;;  %v204_v54 = vld [vmem:[%s2546_s0 + $0xd0] sm:$0xf]  ;;  %v269_v60 = vld [vmem:[%s2546_s0 + $0x1d4] sm:$0xf] }
  0x75   :  { %85 = vst [vmem:[#allocation2 + $0x1e8] sm:$0xff] %v1994_v56  ;;  %v825_v8 = vpack.c.b16 %v706_v1, %v705_v0  ;;  %v841_v9 = vpack.c.b16 %v738_v3, %v737_v2  ;;  %v236_v57 = vld [vmem:[%s2546_s0 + $0x150] sm:$0xf]  ;;  %v309_v1 = vsel %vm1741_vm1, %v172_v52, 0  ;;  %v310_v2 = vsel %vm1741_vm1, %v173_v53, 0 }
  0x76   :  { %86 = vst [vmem:[#allocation2 + $0x1f0] sm:$0xff] %v1994_v56  ;;  %v857_v13 = vpack.c.b16 %v770_v5, %v769_v4  ;;  %v341_v3 = vsel %vm1741_vm1, %v204_v54, 0  ;;  %v342_v4 = vsel %vm1741_vm1, %v205_v55, 0  ;;  %v373_v5 = vsel %vm1741_vm1, %v236_v57, 0  ;;  %v238_v40 = vld [vmem:[%s2546_s0 + $0x158] sm:$0xf] }
  0x77   :  { %87 = vst [vmem:[#allocation2 + $0x1f8] sm:$0xff] %v1994_v56  ;;  %v239_v41 = vld [vmem:[%s2546_s0 + $0x15c] sm:$0xf]  ;;  %v343_v53 = vsel %vm1741_vm1, %v206_v37, 0  ;;  %v344_v54 = vsel %vm1741_vm1, %v207_v38, 0  ;;  %v375_v55 = vsel %vm1741_vm1, %v238_v40, 0 }
  0x78   :  { %102 = vst [vmem:[#allocation2 + $0x270] sm:$0xff] %v1994_v56  ;;  %v376_v58 = vsel %vm1741_vm1, %v239_v41, 0 }
  0x79   :  { %103 = vst [vmem:[#allocation2 + $0x278] sm:$0xff] %v1994_v56 }
  0x7a   :  { %104 = vst [vmem:[#allocation2 + $0x280] sm:$0xff] %v1994_v56 }
  0x7b   :  { %105 = vst [vmem:[#allocation2 + $0x288] sm:$0xff] %v1994_v56 }
  0x7c   :  { %106 = vst [vmem:[#allocation2 + $0x290] sm:$0xff] %v1994_v56 }
  0x7d   :  { %107 = vst [vmem:[#allocation2 + $0x298] sm:$0xff] %v1994_v56 }
  0x7e   :  { %108 = vst [vmem:[#allocation2 + $0x2a0] sm:$0xff] %v1994_v56 }
  0x7f   :  { %109 = vst [vmem:[#allocation2 + $0x2a8] sm:$0xff] %v1994_v56 }
  0x80   :  { %110 = vst [vmem:[#allocation2 + $0x2b0] sm:$0xff] %v1994_v56 }
  0x81   :  { %1031 = vmatmul.bf16.gmra.mxu0 %v823_v15  ;;  %1111 = vmatmul.bf16.gmra.mxu1 %v839_v16  ;;  %111 = vst [vmem:[#allocation2 + $0x2b8] sm:$0xff] %v1994_v56  ;;  %v170_v16 = vld [vmem:[%s2546_s0 + $0x48] sm:$0xf] }
  0x82   :  { %1191 = vmatmul.bf16.gmra.mxu2 %v855_v17  ;;  %1271 = vmatmul.bf16.gmra.mxu3 %v871_v18  ;;  %v171_v17 = vld [vmem:[%s2546_s0 + $0x4c] sm:$0xf]  ;;  %112 = vst [vmem:[#allocation2 + $0x2c0] sm:$0xff] %v1994_v56  ;;  %v307_v20 = vsel %vm1741_vm1, %v170_v16, 0  ;;  %v773_v16 = vunpack.c.l.b16 %v373_v5  ;;  %v776_v5 = vunpack.c.l.b16 %v376_v58 }
  0x83   :  { %v308_v21 = vsel %vm1741_vm1, %v171_v17, 0  ;;  %113 = vst [vmem:[#allocation2 + $0x2c8] sm:$0xff] %v1994_v56  ;;  %v707_v30 = vunpack.c.l.b16 %v307_v20  ;;  %v774_v17 = vunpack.c.l.b16 %v374_v6  ;;  %v805_v20 = vunpack.c.l.b16 %v405_v7 }
  0x84   :  { %114 = vst [vmem:[#allocation2 + $0x2d0] sm:$0xff] %v1994_v56  ;;  %v708_v31 = vunpack.c.l.b16 %v308_v21 }
  0x85   :  { %115 = vst [vmem:[#allocation2 + $0x2d8] sm:$0xff] %v1994_v56  ;;  %v859_v32 = vpack.c.b16 %v774_v17, %v773_v16 }
  0x86   :  { %116 = vst [vmem:[#allocation2 + $0x2e0] sm:$0xff] %v1994_v56 }
  0x87   :  { %117 = vst [vmem:[#allocation2 + $0x2e8] sm:$0xff] %v1994_v56 }
  0x88   :  { %118 = vst [vmem:[#allocation2 + $0x2f0] sm:$0xff] %v1994_v56 }
  0x89   :  { %119 = vst [vmem:[#allocation2 + $0x2f8] sm:$0xff] %v1994_v56 }
  0x8a   :  { %135 = vst [vmem:[#allocation2 + $0x378] sm:$0xff] %v1994_v56 }
  0x8b   :  { %136 = vst [vmem:[#allocation2 + $0x380] sm:$0xff] %v1994_v56 }
  0x8c   :  { %137 = vst [vmem:[#allocation2 + $0x388] sm:$0xff] %v1994_v56 }
  0x8d   :  { %138 = vst [vmem:[#allocation2 + $0x390] sm:$0xff] %v1994_v56 }
  0x8e   :  { %139 = vst [vmem:[#allocation2 + $0x398] sm:$0xff] %v1994_v56 }
  0x8f   :  { %140 = vst [vmem:[#allocation2 + $0x3a0] sm:$0xff] %v1994_v56 }
  0x90   :  { %141 = vst [vmem:[#allocation2 + $0x3a8] sm:$0xff] %v1994_v56 }
  0x91   :  { %1036 = vmatmul.bf16.gmra.mxu0 %v824_v43  ;;  %1116 = vmatmul.bf16.gmra.mxu1 %v840_v44  ;;  %v804_v43 = vunpack.c.l.b16 %v404_v39  ;;  %142 = vst [vmem:[#allocation2 + $0x3b0] sm:$0xff] %v1994_v56 }
  0x92   :  { %1196 = vmatmul.bf16.gmra.mxu2 %v856_v45  ;;  %1276 = vmatmul.bf16.gmra.mxu3 %v872_v46  ;;  %v826_v46 = vpack.c.b16 %v708_v31, %v707_v30  ;;  %143 = vst [vmem:[#allocation2 + $0x3b8] sm:$0xff] %v1994_v56 }
  0x93   :  { %v874_v51 = vpack.c.b16 %v804_v43, %v803_v42  ;;  %144 = vst [vmem:[#allocation2 + $0x3c0] sm:$0xff] %v1994_v56  ;;  %v270_v43 = vld [vmem:[%s2546_s0 + $0x1d8] sm:$0xf] }
  0x94   :  { %145 = vst [vmem:[#allocation2 + $0x3c8] sm:$0xff] %v1994_v56  ;;  %v407_v59 = vsel %vm1741_vm1, %v270_v43, 0 }
  0x95   :  { %146 = vst [vmem:[#allocation2 + $0x3d0] sm:$0xff] %v1994_v56  ;;  %v807_v6 = vunpack.c.l.b16 %v407_v59 }
  0x96   :  { %147 = vst [vmem:[#allocation2 + $0x3d8] sm:$0xff] %v1994_v56 }
  0x97   :  { %148 = vst [vmem:[#allocation2 + $0x3e0] sm:$0xff] %v1994_v56 }
  0x98   :  { %149 = vst [vmem:[#allocation2 + $0x3e8] sm:$0xff] %v1994_v56 }
  0x99   :  { %150 = vst [vmem:[#allocation2 + $0x3f0] sm:$0xff] %v1994_v56 }
  0x9a   :  { %151 = vst [vmem:[#allocation2 + $0x3f8] sm:$0xff] %v1994_v56 }
  0x9e   :  { %v1002_v10 = vpop.f32.mrf.mxu0  ;;  %v2150_v12 = vpop.f32.mrf.mxu1 }
  0x9f   :  { %v1322_v15 = vadd.f32 %v1994_v56, %v1002_v10  ;;  %v709_v10 = vunpack.c.l.b16 %v309_v1  ;;  %v743_v1 = vunpack.c.l.b16 %v343_v53 }
  0xa1   :  { %1450 = vst [vmem:[#allocation2] sm:$0xff] %v1322_v15  ;;  %1041 = vmatmul.bf16.gmra.mxu0 %v825_v8  ;;  %1121 = vmatmul.bf16.gmra.mxu1 %v841_v9  ;;  %v406_v8 = vsel %vm1741_vm1, %v269_v60, 0  ;;  %v1354_v9 = vadd.f32 %v1994_v56, %v2150_v12  ;;  %v742_v15 = vunpack.c.l.b16 %v342_v4 }
  0xa2   :  { %1201 = vmatmul.bf16.gmra.mxu2 %v857_v13  ;;  %1281 = vmatmul.bf16.gmra.mxu3 %v873_v14  ;;  %v710_v13 = vunpack.c.l.b16 %v310_v2  ;;  %v741_v14 = vunpack.c.l.b16 %v341_v3  ;;  %v806_v21 = vunpack.c.l.b16 %v406_v8  ;;  %v744_v2 = vunpack.c.l.b16 %v344_v54 }
  0xa3   :  { %1482 = vst [vmem:[#allocation2 + $0x100] sm:$0xff] %v1354_v9  ;;  %v775_v3 = vunpack.c.l.b16 %v375_v55 }
  0xa4   :  { %v827_v28 = vpack.c.b16 %v710_v13, %v709_v10  ;;  %v843_v29 = vpack.c.b16 %v742_v15, %v741_v14  ;;  %v875_v33 = vpack.c.b16 %v806_v21, %v805_v20  ;;  %v844_v16 = vpack.c.b16 %v744_v2, %v743_v1 }
  0xa5   :  { %v2165_v18 = vpop.f32.mrf.mxu2  ;;  %v2167_v19 = vpop.f32.mrf.mxu3 }
  0xa6   :  { %v2177_v23 = vpop.f32.mrf.mxu0  ;;  %v2179_v24 = vpop.f32.mrf.mxu1  ;;  %v1386_v22 = vadd.f32 %v1994_v56, %v2165_v18  ;;  %v1418_v12 = vadd.f32 %v1994_v56, %v2167_v19 }
  0xa7   :  { %v1323_v25 = vadd.f32 %v1994_v56, %v2177_v23  ;;  %v1355_v30 = vadd.f32 %v1994_v56, %v2179_v24  ;;  %v174_v24 = vld [vmem:[%s2546_s0 + $0x58] sm:$0xf] }
  0xa8   :  { %1514 = vst [vmem:[#allocation2 + $0x200] sm:$0xff] %v1386_v22  ;;  %v860_v22 = vpack.c.b16 %v776_v5, %v775_v3 }
  0xa9   :  { %1546 = vst [vmem:[#allocation2 + $0x300] sm:$0xff] %v1418_v12 }
  0xaa   :  { %1451 = vst [vmem:[#allocation2 + $0x8] sm:$0xff] %v1323_v25 }
  0xab   :  { %1483 = vst [vmem:[#allocation2 + $0x108] sm:$0xff] %v1355_v30 }
  0xad   :  { %v2215_v44 = vpop.f32.mrf.mxu2  ;;  %v2217_v45 = vpop.f32.mrf.mxu3 }
  0xae   :  { %v2220_v48 = vpop.f32.mrf.mxu0  ;;  %v2222_v49 = vpop.f32.mrf.mxu1  ;;  %v1387_v19 = vadd.f32 %v1994_v56, %v2215_v44  ;;  %v1419_v23 = vadd.f32 %v1994_v56, %v2217_v45  ;;  %v271_v44 = vld [vmem:[%s2546_s0 + $0x1dc] sm:$0xf] }
  0xaf   :  { %v1324_v34 = vadd.f32 %v1994_v56, %v2220_v48  ;;  %v1356_v36 = vadd.f32 %v1994_v56, %v2222_v49  ;;  %v311_v48 = vsel %vm1741_vm1, %v174_v24, 0  ;;  %v312_v49 = vsel %vm1741_vm1, %v175_v35, 0 }
  0xb0   :  { %1515 = vst [vmem:[#allocation2 + $0x208] sm:$0xff] %v1387_v19  ;;  %v408_v60 = vsel %vm1741_vm1, %v271_v44, 0  ;;  %v272_v19 = vld [vmem:[%s2546_s0 + $0x1e0] sm:$0xf] }
  0xb1   :  { %1046 = vmatmul.bf16.gmra.mxu0 %v826_v46  ;;  %1126 = vmatmul.bf16.gmra.mxu1 %v842_v47  ;;  %1547 = vst [vmem:[#allocation2 + $0x308] sm:$0xff] %v1419_v23  ;;  %v808_v7 = vunpack.c.l.b16 %v408_v60  ;;  %v273_v23 = vld [vmem:[%s2546_s0 + $0x1e4] sm:$0xf] }
  0xb2   :  { %1206 = vmatmul.bf16.gmra.mxu2 %v858_v50  ;;  %1286 = vmatmul.bf16.gmra.mxu3 %v874_v51  ;;  %1452 = vst [vmem:[#allocation2 + $0x10] sm:$0xff] %v1324_v34 }
  0xb3   :  { %1484 = vst [vmem:[#allocation2 + $0x110] sm:$0xff] %v1356_v36  ;;  %v876_v12 = vpack.c.b16 %v808_v7, %v807_v6  ;;  %v178_v6 = vld [vmem:[%s2546_s0 + $0x68] sm:$0xf]  ;;  %v179_v7 = vld [vmem:[%s2546_s0 + $0x6c] sm:$0xf] }
  0xb5   :  { %v1167_v61 = vpop.f32.mrf.mxu2  ;;  %v1247_v62 = vpop.f32.mrf.mxu3 }
  0xb6   :  { %v2256_v63 = vpop.f32.mrf.mxu0  ;;  %v2258_v0 = vpop.f32.mrf.mxu1  ;;  %v1388_v39 = vadd.f32 %v1994_v56, %v1167_v61  ;;  %v1420_v42 = vadd.f32 %v1994_v56, %v1247_v62  ;;  %v711_v62 = vunpack.c.l.b16 %v311_v48  ;;  %v410_v48 = vsel %vm1741_vm1, %v273_v23, 0 }
  0xb7   :  { %v1325_v45 = vadd.f32 %v1994_v56, %v2256_v63  ;;  %v1357_v50 = vadd.f32 %v1994_v56, %v2258_v0  ;;  %v712_v63 = vunpack.c.l.b16 %v312_v49 }
  0xb8   :  { %1516 = vst [vmem:[#allocation2 + $0x210] sm:$0xff] %v1388_v39 }
  0xb9   :  { %1548 = vst [vmem:[#allocation2 + $0x310] sm:$0xff] %v1420_v42  ;;  %v828_v15 = vpack.c.b16 %v712_v63, %v711_v62 }
  0xba   :  { %1453 = vst [vmem:[#allocation2 + $0x18] sm:$0xff] %v1325_v45 }
  0xbb   :  { %1485 = vst [vmem:[#allocation2 + $0x118] sm:$0xff] %v1357_v50 }
  0xbd   :  { %v1169_v26 = vpop.f32.mrf.mxu2  ;;  %v1249_v27 = vpop.f32.mrf.mxu3 }
  0xbe   :  { %v1012_v31 = vpop.f32.mrf.mxu0  ;;  %v1092_v18 = vpop.f32.mrf.mxu1  ;;  %v1389_v57 = vadd.f32 %v1994_v56, %v1169_v26  ;;  %v1421_v61 = vadd.f32 %v1994_v56, %v1249_v27 }
  0xbf   :  { %v1326_v0 = vadd.f32 %v1994_v56, %v1012_v31  ;;  %v1358_v4 = vadd.f32 %v1994_v56, %v1092_v18  ;;  %v208_v31 = vld [vmem:[%s2546_s0 + $0xe0] sm:$0xf]  ;;  %v209_v18 = vld [vmem:[%s2546_s0 + $0xe4] sm:$0xf] }
  0xc0   :  { %1517 = vst [vmem:[#allocation2 + $0x218] sm:$0xff] %v1389_v57  ;;  %v345_v37 = vsel %vm1741_vm1, %v208_v31, 0  ;;  %v346_v38 = vsel %vm1741_vm1, %v209_v18, 0  ;;  %v810_v57 = vunpack.c.l.b16 %v410_v48 }
  0xc1   :  { %1051 = vmatmul.bf16.gmra.mxu0 %v827_v28  ;;  %1131 = vmatmul.bf16.gmra.mxu1 %v843_v29  ;;  %1549 = vst [vmem:[#allocation2 + $0x318] sm:$0xff] %v1421_v61  ;;  %v176_v28 = vld [vmem:[%s2546_s0 + $0x60] sm:$0xf]  ;;  %v177_v29 = vld [vmem:[%s2546_s0 + $0x64] sm:$0xf] }
  0xc2   :  { %1211 = vmatmul.bf16.gmra.mxu2 %v859_v32  ;;  %1291 = vmatmul.bf16.gmra.mxu3 %v875_v33  ;;  %1454 = vst [vmem:[#allocation2 + $0x20] sm:$0xff] %v1326_v0  ;;  %v240_v32 = vld [vmem:[%s2546_s0 + $0x160] sm:$0xf]  ;;  %v241_v33 = vld [vmem:[%s2546_s0 + $0x164] sm:$0xf]  ;;  %v313_v35 = vsel %vm1741_vm1, %v176_v28, 0 }
  0xc3   :  { %1486 = vst [vmem:[#allocation2 + $0x120] sm:$0xff] %v1358_v4  ;;  %v314_v36 = vsel %vm1741_vm1, %v177_v29, 0  ;;  %v377_v43 = vsel %vm1741_vm1, %v240_v32, 0  ;;  %v378_v44 = vsel %vm1741_vm1, %v241_v33, 0  ;;  %v713_v49 = vunpack.c.l.b16 %v313_v35 }
  0xc4   :  { %v714_v50 = vunpack.c.l.b16 %v314_v36  ;;  %v777_v53 = vunpack.c.l.b16 %v377_v43  ;;  %v778_v54 = vunpack.c.l.b16 %v378_v44 }
  0xc5   :  { %v1172_v46 = vpop.f32.mrf.mxu2  ;;  %v1252_v47 = vpop.f32.mrf.mxu3 }
  0xc6   :  { %v1014_v51 = vpop.f32.mrf.mxu0  ;;  %v1094_v52 = vpop.f32.mrf.mxu1  ;;  %v1390_v8 = vadd.f32 %v1994_v56, %v1172_v46  ;;  %v1422_v9 = vadd.f32 %v1994_v56, %v1252_v47  ;;  %v409_v47 = vsel %vm1741_vm1, %v272_v19, 0  ;;  %v829_v60 = vpack.c.b16 %v714_v50, %v713_v49 }
  0xc7   :  { %v1327_v10 = vadd.f32 %v1994_v56, %v1014_v51  ;;  %v1359_v17 = vadd.f32 %v1994_v56, %v1094_v52  ;;  %v745_v51 = vunpack.c.l.b16 %v345_v37  ;;  %v746_v52 = vunpack.c.l.b16 %v346_v38 }
  0xc8   :  { %1518 = vst [vmem:[#allocation2 + $0x220] sm:$0xff] %v1390_v8  ;;  %v809_v55 = vunpack.c.l.b16 %v409_v47  ;;  %v861_v2 = vpack.c.b16 %v778_v54, %v777_v53  ;;  %v210_v8 = vld [vmem:[%s2546_s0 + $0xe8] sm:$0xf]  ;;  %v212_v53 = vld [vmem:[%s2546_s0 + $0xf0] sm:$0xf] }
  0xc9   :  { %1550 = vst [vmem:[#allocation2 + $0x320] sm:$0xff] %v1422_v9  ;;  %v845_v61 = vpack.c.b16 %v746_v52, %v745_v51  ;;  %v211_v9 = vld [vmem:[%s2546_s0 + $0xec] sm:$0xf]  ;;  %v180_v51 = vld [vmem:[%s2546_s0 + $0x70] sm:$0xf] }
  0xca   :  { %1455 = vst [vmem:[#allocation2 + $0x28] sm:$0xff] %v1327_v10  ;;  %v877_v3 = vpack.c.b16 %v810_v57, %v809_v55  ;;  %v242_v10 = vld [vmem:[%s2546_s0 + $0x168] sm:$0xf]  ;;  %v181_v52 = vld [vmem:[%s2546_s0 + $0x74] sm:$0xf] }
  0xcb   :  { %1487 = vst [vmem:[#allocation2 + $0x128] sm:$0xff] %v1359_v17  ;;  %v379_v29 = vsel %vm1741_vm1, %v242_v10, 0  ;;  %v213_v54 = vld [vmem:[%s2546_s0 + $0xf4] sm:$0xf]  ;;  %v244_v55 = vld [vmem:[%s2546_s0 + $0x170] sm:$0xf] }
  0xcc   :  { %v779_v35 = vunpack.c.l.b16 %v379_v29  ;;  %v245_v57 = vld [vmem:[%s2546_s0 + $0x174] sm:$0xf] }
  0xcd   :  { %v1174_v13 = vpop.f32.mrf.mxu2  ;;  %v1254_v14 = vpop.f32.mrf.mxu3 }
  0xce   :  { %v1017_v20 = vpop.f32.mrf.mxu0  ;;  %v1097_v21 = vpop.f32.mrf.mxu1  ;;  %v1391_v25 = vadd.f32 %v1994_v56, %v1174_v13  ;;  %v1423_v26 = vadd.f32 %v1994_v56, %v1254_v14  ;;  %v243_v13 = vld [vmem:[%s2546_s0 + $0x16c] sm:$0xf]  ;;  %v274_v14 = vld [vmem:[%s2546_s0 + $0x1e8] sm:$0xf] }
  0xcf   :  { %v1328_v27 = vadd.f32 %v1994_v56, %v1017_v20  ;;  %v1360_v30 = vadd.f32 %v1994_v56, %v1097_v21  ;;  %v315_v20 = vsel %vm1741_vm1, %v178_v6, 0  ;;  %v316_v21 = vsel %vm1741_vm1, %v179_v7, 0 }
  0xd0   :  { %1519 = vst [vmem:[#allocation2 + $0x228] sm:$0xff] %v1391_v25  ;;  %v411_v32 = vsel %vm1741_vm1, %v274_v14, 0  ;;  %v715_v19 = vunpack.c.l.b16 %v315_v20  ;;  %v716_v23 = vunpack.c.l.b16 %v316_v21  ;;  %v381_v6 = vsel %vm1741_vm1, %v244_v55, 0 }
  0xd1   :  { %1056 = vmatmul.bf16.gmra.mxu0 %v828_v15  ;;  %1136 = vmatmul.bf16.gmra.mxu1 %v844_v16  ;;  %1551 = vst [vmem:[#allocation2 + $0x328] sm:$0xff] %v1423_v26  ;;  %v275_v15 = vld [vmem:[%s2546_s0 + $0x1ec] sm:$0xf]  ;;  %v811_v37 = vunpack.c.l.b16 %v411_v32  ;;  %v382_v7 = vsel %vm1741_vm1, %v245_v57, 0  ;;  %v781_v20 = vunpack.c.l.b16 %v381_v6 }
  0xd2   :  { %1216 = vmatmul.bf16.gmra.mxu2 %v860_v22  ;;  %1296 = vmatmul.bf16.gmra.mxu3 %v876_v12  ;;  %1456 = vst [vmem:[#allocation2 + $0x30] sm:$0xff] %v1328_v27  ;;  %v347_v22 = vsel %vm1741_vm1, %v210_v8, 0  ;;  %v348_v12 = vsel %vm1741_vm1, %v211_v9, 0  ;;  %v412_v33 = vsel %vm1741_vm1, %v275_v15, 0  ;;  %v782_v21 = vunpack.c.l.b16 %v382_v7 }
  0xd3   :  { %1488 = vst [vmem:[#allocation2 + $0x130] sm:$0xff] %v1360_v30  ;;  %v380_v30 = vsel %vm1741_vm1, %v243_v13, 0  ;;  %v812_v38 = vunpack.c.l.b16 %v412_v33 }
  0xd4   :  { %v780_v36 = vunpack.c.l.b16 %v380_v30  ;;  %v863_v32 = vpack.c.b16 %v782_v21, %v781_v20  ;;  %v495_v21 = vld [vmem:[#allocation2 + $0x270] sm:$0xff] }
  0xd5   :  { %v1177_v34 = vpop.f32.mrf.mxu2  ;;  %v1257_v24 = vpop.f32.mrf.mxu3  ;;  %v878_v48 = vpack.c.b16 %v812_v38, %v811_v37  ;;  %v246_v37 = vld [vmem:[%s2546_s0 + $0x178] sm:$0xf]  ;;  %v247_v38 = vld [vmem:[%s2546_s0 + $0x17c] sm:$0xf] }
  0xd6   :  { %v1392_v39 = vadd.f32 %v1994_v56, %v1177_v34  ;;  %v1424_v40 = vadd.f32 %v1994_v56, %v1257_v24  ;;  %v1019_v41 = vpop.f32.mrf.mxu0  ;;  %v1099_v42 = vpop.f32.mrf.mxu1  ;;  %v747_v34 = vunpack.c.l.b16 %v347_v22  ;;  %v748_v24 = vunpack.c.l.b16 %v348_v12 }
  0xd7   :  { %v1329_v45 = vadd.f32 %v1994_v56, %v1019_v41  ;;  %v1361_v46 = vadd.f32 %v1994_v56, %v1099_v42  ;;  %v830_v41 = vpack.c.b16 %v716_v23, %v715_v19  ;;  %v862_v47 = vpack.c.b16 %v780_v36, %v779_v35  ;;  %v214_v35 = vld [vmem:[%s2546_s0 + $0xf8] sm:$0xf]  ;;  %v430_v36 = vld [vmem:[#allocation2 + $0x68] sm:$0xff] }
  0xd8   :  { %1520 = vst [vmem:[#allocation2 + $0x230] sm:$0xff] %v1392_v39  ;;  %v846_v42 = vpack.c.b16 %v748_v24, %v747_v34  ;;  %v182_v34 = vld [vmem:[%s2546_s0 + $0x78] sm:$0xf]  ;;  %v183_v24 = vld [vmem:[%s2546_s0 + $0x7c] sm:$0xf] }
  0xd9   :  { %1552 = vst [vmem:[#allocation2 + $0x330] sm:$0xff] %v1424_v40 }
  0xda   :  { %1457 = vst [vmem:[#allocation2 + $0x38] sm:$0xff] %v1329_v45 }
  0xdb   :  { %1489 = vst [vmem:[#allocation2 + $0x138] sm:$0xff] %v1361_v46 }
  0xdd   :  { %v1179_v58 = vpop.f32.mrf.mxu2  ;;  %v1259_v59 = vpop.f32.mrf.mxu3 }
  0xde   :  { %v1393_v62 = vadd.f32 %v1994_v56, %v1179_v58  ;;  %v1425_v63 = vadd.f32 %v1994_v56, %v1259_v59  ;;  %v1022_v0 = vpop.f32.mrf.mxu0  ;;  %v1102_v1 = vpop.f32.mrf.mxu1  ;;  %v276_v58 = vld [vmem:[%s2546_s0 + $0x1f0] sm:$0xf]  ;;  %v277_v59 = vld [vmem:[%s2546_s0 + $0x1f4] sm:$0xf] }
  0xdf   :  { %v1330_v4 = vadd.f32 %v1994_v56, %v1022_v0  ;;  %v1362_v5 = vadd.f32 %v1994_v56, %v1102_v1  ;;  %v349_v0 = vsel %vm1741_vm1, %v212_v53, 0  ;;  %v350_v1 = vsel %vm1741_vm1, %v213_v54, 0 }
  0xe0   :  { %1521 = vst [vmem:[#allocation2 + $0x238] sm:$0xff] %v1393_v62  ;;  %v317_v62 = vsel %vm1741_vm1, %v180_v51, 0  ;;  %v413_v10 = vsel %vm1741_vm1, %v276_v58, 0  ;;  %v414_v13 = vsel %vm1741_vm1, %v277_v59, 0  ;;  %v383_v53 = vsel %vm1741_vm1, %v246_v37, 0 }
  0xe1   :  { %1553 = vst [vmem:[#allocation2 + $0x338] sm:$0xff] %v1425_v63  ;;  %1061 = vmatmul.bf16.gmra.mxu0 %v829_v60  ;;  %1141 = vmatmul.bf16.gmra.mxu1 %v845_v61  ;;  %v318_v63 = vsel %vm1741_vm1, %v181_v52, 0  ;;  %v717_v14 = vunpack.c.l.b16 %v317_v62  ;;  %v813_v22 = vunpack.c.l.b16 %v413_v10  ;;  %v814_v12 = vunpack.c.l.b16 %v414_v13 }
  0xe2   :  { %1458 = vst [vmem:[#allocation2 + $0x40] sm:$0xff] %v1330_v4  ;;  %1221 = vmatmul.bf16.gmra.mxu2 %v861_v2  ;;  %1301 = vmatmul.bf16.gmra.mxu3 %v877_v3  ;;  %v718_v15 = vunpack.c.l.b16 %v318_v63  ;;  %v384_v54 = vsel %vm1741_vm1, %v247_v38, 0 }
  0xe3   :  { %1490 = vst [vmem:[#allocation2 + $0x140] sm:$0xff] %v1362_v5  ;;  %v879_v33 = vpack.c.b16 %v814_v12, %v813_v22  ;;  %v432_v22 = vld [vmem:[#allocation2 + $0x78] sm:$0xff] }
  0xe4   :  { %v464_v12 = vld [vmem:[#allocation2 + $0x178] sm:$0xff] }
  0xe5   :  { %v1182_v16 = vpop.f32.mrf.mxu2  ;;  %v1262_v17 = vpop.f32.mrf.mxu3 }
  0xe6   :  { %v1394_v25 = vadd.f32 %v1994_v56, %v1182_v16  ;;  %v1426_v26 = vadd.f32 %v1994_v56, %v1262_v17  ;;  %v1024_v27 = vpop.f32.mrf.mxu0  ;;  %v1104_v28 = vpop.f32.mrf.mxu1  ;;  %v749_v16 = vunpack.c.l.b16 %v349_v0  ;;  %v750_v17 = vunpack.c.l.b16 %v350_v1 }
  0xe7   :  { %v1331_v31 = vadd.f32 %v1994_v56, %v1024_v27  ;;  %v1363_v18 = vadd.f32 %v1994_v56, %v1104_v28  ;;  %v831_v27 = vpack.c.b16 %v718_v15, %v717_v14  ;;  %v783_v0 = vunpack.c.l.b16 %v383_v53  ;;  %v530_v53 = vld [vmem:[#allocation2 + $0x388] sm:$0xff] }
  0xe8   :  { %1522 = vst [vmem:[#allocation2 + $0x240] sm:$0xff] %v1394_v25  ;;  %v847_v28 = vpack.c.b16 %v750_v17, %v749_v16  ;;  %v784_v1 = vunpack.c.l.b16 %v384_v54  ;;  %v435_v54 = vld [vmem:[#allocation2 + $0x90] sm:$0xff] }
  0xe9   :  { %1554 = vst [vmem:[#allocation2 + $0x340] sm:$0xff] %v1426_v26 }
  0xea   :  { %1459 = vst [vmem:[#allocation2 + $0x48] sm:$0xff] %v1331_v31  ;;  %v864_v15 = vpack.c.b16 %v784_v1, %v783_v0  ;;  %v499_v1 = vld [vmem:[#allocation2 + $0x290] sm:$0xff] }
  0xeb   :  { %1491 = vst [vmem:[#allocation2 + $0x148] sm:$0xff] %v1363_v18 }
  0xed   :  { %v1184_v39 = vpop.f32.mrf.mxu2  ;;  %v1264_v40 = vpop.f32.mrf.mxu3 }
  0xee   :  { %v1395_v43 = vadd.f32 %v1994_v56, %v1184_v39  ;;  %v1427_v44 = vadd.f32 %v1994_v56, %v1264_v40  ;;  %v1027_v45 = vpop.f32.mrf.mxu0  ;;  %v1107_v46 = vpop.f32.mrf.mxu1  ;;  %v462_v39 = vld [vmem:[#allocation2 + $0x168] sm:$0xff]  ;;  %v278_v40 = vld [vmem:[%s2546_s0 + $0x1f8] sm:$0xf] }
  0xef   :  { %v1332_v49 = vadd.f32 %v1994_v56, %v1027_v45  ;;  %v1364_v50 = vadd.f32 %v1994_v56, %v1107_v46  ;;  %v320_v45 = vsel %vm1741_vm1, %v183_v24, 0  ;;  %v351_v46 = vsel %vm1741_vm1, %v214_v35, 0 }
  0xf0   :  { %1523 = vst [vmem:[#allocation2 + $0x248] sm:$0xff] %v1395_v43  ;;  %v415_v58 = vsel %vm1741_vm1, %v278_v40, 0  ;;  %v751_v62 = vunpack.c.l.b16 %v351_v46  ;;  %v497_v40 = vld [vmem:[#allocation2 + $0x280] sm:$0xff] }
  0xf1   :  { %1555 = vst [vmem:[#allocation2 + $0x348] sm:$0xff] %v1427_v44  ;;  %1066 = vmatmul.bf16.gmra.mxu0 %v830_v41  ;;  %1146 = vmatmul.bf16.gmra.mxu1 %v846_v42  ;;  %v279_v41 = vld [vmem:[%s2546_s0 + $0x1fc] sm:$0xf]  ;;  %v319_v44 = vsel %vm1741_vm1, %v182_v34, 0 }
  0xf2   :  { %1460 = vst [vmem:[#allocation2 + $0x50] sm:$0xff] %v1332_v49  ;;  %1226 = vmatmul.bf16.gmra.mxu2 %v862_v47  ;;  %1306 = vmatmul.bf16.gmra.mxu3 %v878_v48  ;;  %v1664_v48 = vld [vmem:[#allocation2 + $0x68] sm:$0xff]  ;;  %v416_v59 = vsel %vm1741_vm1, %v279_v41, 0  ;;  %v529_v41 = vld [vmem:[#allocation2 + $0x380] sm:$0xff] }
  0xf3   :  { %1492 = vst [vmem:[#allocation2 + $0x150] sm:$0xff] %v1364_v50 }
  0xf5   :  { %v1187_v60 = vpop.f32.mrf.mxu2  ;;  %v1267_v61 = vpop.f32.mrf.mxu3 }
  0xf6   :  { %v1396_v2 = vadd.f32 %v1994_v56, %v1187_v60  ;;  %v1428_v3 = vadd.f32 %v1994_v56, %v1267_v61  ;;  %v1029_v4 = vpop.f32.mrf.mxu0  ;;  %v1109_v5 = vpop.f32.mrf.mxu1  ;;  %v719_v60 = vunpack.c.l.b16 %v319_v44  ;;  %v720_v61 = vunpack.c.l.b16 %v320_v45 }
  0xf7   :  { %v1333_v8 = vadd.f32 %v1994_v56, %v1029_v4  ;;  %v1365_v9 = vadd.f32 %v1994_v56, %v1109_v5  ;;  %v431_v4 = vld [vmem:[#allocation2 + $0x70] sm:$0xff] }
  0xf8   :  { %1524 = vst [vmem:[#allocation2 + $0x250] sm:$0xff] %v1396_v2  ;;  %v815_v2 = vunpack.c.l.b16 %v415_v58  ;;  %v463_v5 = vld [vmem:[#allocation2 + $0x170] sm:$0xff] }
  0xf9   :  { %1556 = vst [vmem:[#allocation2 + $0x350] sm:$0xff] %v1428_v3  ;;  %v816_v3 = vunpack.c.l.b16 %v416_v59 }
  0xfa   :  { %1461 = vst [vmem:[#allocation2 + $0x58] sm:$0xff] %v1333_v8  ;;  %v832_v8 = vpack.c.b16 %v720_v61, %v719_v60 }
  0xfb   :  { %1493 = vst [vmem:[#allocation2 + $0x158] sm:$0xff] %v1365_v9  ;;  %v880_v16 = vpack.c.b16 %v816_v3, %v815_v2  ;;  %v531_v2 = vld [vmem:[#allocation2 + $0x390] sm:$0xff]  ;;  %v436_v3 = vld [vmem:[#allocation2 + $0x98] sm:$0xff] }
  0xfd   :  { %v1189_v25 = vpop.f32.mrf.mxu2  ;;  %v1269_v26 = vpop.f32.mrf.mxu3 }
  0xfe   :  { %v1397_v29 = vadd.f32 %v1994_v56, %v1189_v25  ;;  %v1429_v30 = vadd.f32 %v1994_v56, %v1269_v26  ;;  %v1032_v31 = vpop.f32.mrf.mxu0  ;;  %v1112_v18 = vpop.f32.mrf.mxu1 }
  0xff   :  { %v1334_v19 = vadd.f32 %v1994_v56, %v1032_v31  ;;  %v1366_v23 = vadd.f32 %v1994_v56, %v1112_v18  ;;  %v215_v56 = vld [vmem:[%s2546_s0 + $0xfc] sm:$0xf]  ;;  %s1691_s0 = smov [#allocation2]  }
 0x100   :  { %1525 = vst [vmem:[#allocation2 + $0x258] sm:$0xff] %v1397_v29  ;;  %v352_v47 = vsel %vm1741_vm1, %v215_v56, 0  ;;  %s1582_s29 = sshll.u32 %s1691_s0, 4  ;;  %s1583_s29 = int_to_ptr.vmem [resolvable:$true] %s1582_s29 }
 0x101   :  { %1557 = vst [vmem:[#allocation2 + $0x358] sm:$0xff] %v1429_v30  ;;  %1071 = vmatmul.bf16.gmra.mxu0 %v831_v27  ;;  %1151 = vmatmul.bf16.gmra.mxu1 %v847_v28  ;;  %v752_v63 = vunpack.c.l.b16 %v352_v47 }
 0x102   :  { %1462 = vst [vmem:[#allocation2 + $0x60] sm:$0xff] %v1334_v19  ;;  %1231 = vmatmul.bf16.gmra.mxu2 %v863_v32  ;;  %1311 = vmatmul.bf16.gmra.mxu3 %v879_v33  ;;  %v496_v32 = vld [vmem:[#allocation2 + $0x278] sm:$0xff]  ;;  %v433_v19 = vld [vmem:[#allocation2 + $0x80] sm:$0xff] }
 0x103   :  { %1494 = vst [vmem:[#allocation2 + $0x160] sm:$0xff] %v1366_v23  ;;  %v848_v9 = vpack.c.b16 %v752_v63, %v751_v62  ;;  %v528_v33 = vld [vmem:[#allocation2 + $0x378] sm:$0xff]  ;;  %v465_v23 = vld [vmem:[#allocation2 + $0x180] sm:$0xff] }
 0x105   :  { %v1192_v42 = vpop.f32.mrf.mxu2  ;;  %v1272_v43 = vpop.f32.mrf.mxu3 }
 0x106   :  { %v1398_v49 = vadd.f32 %v1664_v48, %v1192_v42  ;;  %v1430_v50 = vadd.f32 %v1664_v48, %v1272_v43  ;;  %v1034_v51 = vpop.f32.mrf.mxu0  ;;  %v1114_v52 = vpop.f32.mrf.mxu1  ;;  %v434_v42 = vld [vmem:[#allocation2 + $0x88] sm:$0xff] }
 0x107   :  { %v1335_v55 = vadd.f32 %v1034_v51, %v430_v36  ;;  %v1367_v57 = vadd.f32 %v1114_v52, %v462_v39  ;;  %v466_v43 = vld [vmem:[#allocation2 + $0x188] sm:$0xff] }
 0x108   :  { %1526 = vst [vmem:[#allocation2 + $0x260] sm:$0xff] %v1398_v49  ;;  %v498_v52 = vld [vmem:[#allocation2 + $0x288] sm:$0xff] }
 0x109   :  { %1558 = vst [vmem:[#allocation2 + $0x360] sm:$0xff] %v1430_v50 }
 0x10a   :  { %1463 = vst [vmem:[#allocation2 + $0x68] sm:$0xff] %v1335_v55  ;;  %v467_v55 = vld [vmem:[#allocation2 + $0x190] sm:$0xff] }
 0x10b   :  { %1495 = vst [vmem:[#allocation2 + $0x168] sm:$0xff] %v1367_v57 }
 0x10d   :  { %v1194_v6 = vpop.f32.mrf.mxu2  ;;  %v1274_v7 = vpop.f32.mrf.mxu3 }
 0x10e   :  { %v1399_v11 = vadd.f32 %v1664_v48, %v1194_v6  ;;  %v1431_v10 = vadd.f32 %v1664_v48, %v1274_v7  ;;  %v1037_v13 = vpop.f32.mrf.mxu0  ;;  %v1117_v14 = vpop.f32.mrf.mxu1 }
 0x10f   :  { %v1336_v17 = vadd.f32 %v1037_v13, %v431_v4  ;;  %v1368_v20 = vadd.f32 %v1117_v14, %v463_v5  ;;  %v468_v4 = vld [vmem:[#allocation2 + $0x198] sm:$0xff] }
 0x110   :  { %1527 = vst [vmem:[#allocation2 + $0x268] sm:$0xff] %v1399_v11  ;;  %v500_v14 = vld [vmem:[#allocation2 + $0x298] sm:$0xff] }
 0x111   :  { %1559 = vst [vmem:[#allocation2 + $0x368] sm:$0xff] %v1431_v10  ;;  %1076 = vmatmul.bf16.gmra.mxu0 %v832_v8  ;;  %1156 = vmatmul.bf16.gmra.mxu1 %v848_v9 }
 0x112   :  { %1464 = vst [vmem:[#allocation2 + $0x70] sm:$0xff] %v1336_v17  ;;  %1236 = vmatmul.bf16.gmra.mxu2 %v864_v15  ;;  %1316 = vmatmul.bf16.gmra.mxu3 %v880_v16  ;;  %v532_v15 = vld [vmem:[#allocation2 + $0x398] sm:$0xff]  ;;  %v437_v16 = vld [vmem:[#allocation2 + $0xa0] sm:$0xff] }
 0x113   :  { %1496 = vst [vmem:[#allocation2 + $0x170] sm:$0xff] %v1368_v20  ;;  %v469_v17 = vld [vmem:[#allocation2 + $0x1a0] sm:$0xff] }
 0x115   :  { %v1197_v25 = vpop.f32.mrf.mxu2  ;;  %v1277_v26 = vpop.f32.mrf.mxu3 }
 0x116   :  { %v1400_v27 = vadd.f32 %v1197_v25, %v495_v21  ;;  %v1432_v28 = vadd.f32 %v1664_v48, %v1277_v26  ;;  %v1039_v29 = vpop.f32.mrf.mxu0  ;;  %v1119_v30 = vpop.f32.mrf.mxu1 }
 0x117   :  { %v1337_v31 = vadd.f32 %v1039_v29, %v432_v22  ;;  %v1369_v18 = vadd.f32 %v1119_v30, %v464_v12  ;;  %v501_v29 = vld [vmem:[#allocation2 + $0x2a0] sm:$0xff] }
 0x118   :  { %1528 = vst [vmem:[#allocation2 + $0x270] sm:$0xff] %v1400_v27  ;;  %v533_v30 = vld [vmem:[#allocation2 + $0x3a0] sm:$0xff] }
 0x119   :  { %1560 = vst [vmem:[#allocation2 + $0x370] sm:$0xff] %v1432_v28 }
 0x11a   :  { %1465 = vst [vmem:[#allocation2 + $0x78] sm:$0xff] %v1337_v31  ;;  %v438_v31 = vld [vmem:[#allocation2 + $0xa8] sm:$0xff] }
 0x11b   :  { %1497 = vst [vmem:[#allocation2 + $0x178] sm:$0xff] %v1369_v18  ;;  %v470_v18 = vld [vmem:[#allocation2 + $0x1a8] sm:$0xff] }
 0x11d   :  { %v1199_v34 = vpop.f32.mrf.mxu2  ;;  %v1279_v24 = vpop.f32.mrf.mxu3 }
 0x11e   :  { %v1401_v35 = vadd.f32 %v1199_v34, %v496_v32  ;;  %v1433_v56 = vadd.f32 %v1279_v24, %v528_v33  ;;  %v1042_v36 = vpop.f32.mrf.mxu0  ;;  %v1122_v37 = vpop.f32.mrf.mxu1 }
 0x11f   :  { %v1338_v38 = vadd.f32 %v1042_v36, %v433_v19  ;;  %v1370_v39 = vadd.f32 %v1122_v37, %v465_v23  ;;  %v502_v36 = vld [vmem:[#allocation2 + $0x2a8] sm:$0xff] }
 0x120   :  { %1529 = vst [vmem:[#allocation2 + $0x278] sm:$0xff] %v1401_v35  ;;  %v534_v37 = vld [vmem:[#allocation2 + $0x3a8] sm:$0xff] }
 0x121   :  { %1561 = vst [vmem:[#allocation2 + $0x378] sm:$0xff] %v1433_v56 }
 0x122   :  { %1466 = vst [vmem:[#allocation2 + $0x80] sm:$0xff] %v1338_v38  ;;  %v439_v38 = vld [vmem:[#allocation2 + $0xb0] sm:$0xff] }
 0x123   :  { %1498 = vst [vmem:[#allocation2 + $0x180] sm:$0xff] %v1370_v39  ;;  %v471_v39 = vld [vmem:[#allocation2 + $0x1b0] sm:$0xff] }
 0x125   :  { %v1202_v44 = vpop.f32.mrf.mxu2  ;;  %v1282_v45 = vpop.f32.mrf.mxu3 }
 0x126   :  { %v1402_v46 = vadd.f32 %v1202_v44, %v497_v40  ;;  %v1434_v47 = vadd.f32 %v1282_v45, %v529_v41  ;;  %v1044_v48 = vpop.f32.mrf.mxu0  ;;  %v1124_v49 = vpop.f32.mrf.mxu1 }
 0x127   :  { %v1339_v50 = vadd.f32 %v1044_v48, %v434_v42  ;;  %v1371_v51 = vadd.f32 %v1124_v49, %v466_v43  ;;  %v503_v48 = vld [vmem:[#allocation2 + $0x2b0] sm:$0xff] }
 0x128   :  { %1530 = vst [vmem:[#allocation2 + $0x280] sm:$0xff] %v1402_v46  ;;  %v535_v49 = vld [vmem:[#allocation2 + $0x3b0] sm:$0xff] }
 0x129   :  { %1562 = vst [vmem:[#allocation2 + $0x380] sm:$0xff] %v1434_v47 }
 0x12a   :  { %1467 = vst [vmem:[#allocation2 + $0x88] sm:$0xff] %v1339_v50  ;;  %v440_v50 = vld [vmem:[#allocation2 + $0xb8] sm:$0xff] }
 0x12b   :  { %1499 = vst [vmem:[#allocation2 + $0x188] sm:$0xff] %v1371_v51  ;;  %v472_v51 = vld [vmem:[#allocation2 + $0x1b8] sm:$0xff] }
 0x12d   :  { %v1204_v57 = vpop.f32.mrf.mxu2  ;;  %v1284_v58 = vpop.f32.mrf.mxu3 }
 0x12e   :  { %v1403_v59 = vadd.f32 %v1204_v57, %v498_v52  ;;  %v1435_v60 = vadd.f32 %v1284_v58, %v530_v53  ;;  %v1047_v61 = vpop.f32.mrf.mxu0  ;;  %v1127_v62 = vpop.f32.mrf.mxu1 }
 0x12f   :  { %v1340_v63 = vadd.f32 %v1047_v61, %v435_v54  ;;  %v1372_v0 = vadd.f32 %v1127_v62, %v467_v55  ;;  %v504_v61 = vld [vmem:[#allocation2 + $0x2b8] sm:$0xff] }
 0x130   :  { %1531 = vst [vmem:[#allocation2 + $0x288] sm:$0xff] %v1403_v59  ;;  %v536_v62 = vld [vmem:[#allocation2 + $0x3b8] sm:$0xff] }
 0x131   :  { %1563 = vst [vmem:[#allocation2 + $0x388] sm:$0xff] %v1435_v60 }
 0x132   :  { %1468 = vst [vmem:[#allocation2 + $0x90] sm:$0xff] %v1340_v63  ;;  %v441_v63 = vld [vmem:[#allocation2 + $0xc0] sm:$0xff] }
 0x133   :  { %1500 = vst [vmem:[#allocation2 + $0x190] sm:$0xff] %v1372_v0  ;;  %v473_v0 = vld [vmem:[#allocation2 + $0x1c0] sm:$0xff] }
 0x135   :  { %v1207_v5 = vpop.f32.mrf.mxu2  ;;  %v1287_v6 = vpop.f32.mrf.mxu3 }
 0x136   :  { %v1404_v7 = vadd.f32 %v1207_v5, %v499_v1  ;;  %v1436_v8 = vadd.f32 %v1287_v6, %v531_v2  ;;  %v1049_v9 = vpop.f32.mrf.mxu0  ;;  %v1129_v11 = vpop.f32.mrf.mxu1 }
 0x137   :  { %v1341_v10 = vadd.f32 %v1049_v9, %v436_v3  ;;  %v1373_v13 = vadd.f32 %v1129_v11, %v468_v4  ;;  %v505_v9 = vld [vmem:[#allocation2 + $0x2c0] sm:$0xff] }
 0x138   :  { %1532 = vst [vmem:[#allocation2 + $0x290] sm:$0xff] %v1404_v7  ;;  %v537_v11 = vld [vmem:[#allocation2 + $0x3c0] sm:$0xff] }
 0x139   :  { %1564 = vst [vmem:[#allocation2 + $0x390] sm:$0xff] %v1436_v8 }
 0x13a   :  { %1469 = vst [vmem:[#allocation2 + $0x98] sm:$0xff] %v1341_v10  ;;  %v442_v10 = vld [vmem:[#allocation2 + $0xc8] sm:$0xff] }
 0x13b   :  { %1501 = vst [vmem:[#allocation2 + $0x198] sm:$0xff] %v1373_v13  ;;  %v474_v13 = vld [vmem:[#allocation2 + $0x1c8] sm:$0xff] }
 0x13d   :  { %v1209_v20 = vpop.f32.mrf.mxu2  ;;  %v1289_v21 = vpop.f32.mrf.mxu3 }
 0x13e   :  { %v1405_v22 = vadd.f32 %v1209_v20, %v500_v14  ;;  %v1437_v12 = vadd.f32 %v1289_v21, %v532_v15  ;;  %v1052_v25 = vpop.f32.mrf.mxu0  ;;  %v1132_v26 = vpop.f32.mrf.mxu1 }
 0x13f   :  { %v1342_v27 = vadd.f32 %v1052_v25, %v437_v16  ;;  %v1374_v28 = vadd.f32 %v1132_v26, %v469_v17  ;;  %v506_v25 = vld [vmem:[#allocation2 + $0x2c8] sm:$0xff] }
 0x140   :  { %1533 = vst [vmem:[#allocation2 + $0x298] sm:$0xff] %v1405_v22  ;;  %v538_v26 = vld [vmem:[#allocation2 + $0x3c8] sm:$0xff] }
 0x141   :  { %1565 = vst [vmem:[#allocation2 + $0x398] sm:$0xff] %v1437_v12 }
 0x142   :  { %1470 = vst [vmem:[#allocation2 + $0xa0] sm:$0xff] %v1342_v27  ;;  %v443_v27 = vld [vmem:[#allocation2 + $0xd0] sm:$0xff] }
 0x143   :  { %1502 = vst [vmem:[#allocation2 + $0x1a0] sm:$0xff] %v1374_v28  ;;  %v475_v28 = vld [vmem:[#allocation2 + $0x1d0] sm:$0xff] }
 0x145   :  { %v1212_v32 = vpop.f32.mrf.mxu2  ;;  %v1292_v33 = vpop.f32.mrf.mxu3 }
 0x146   :  { %v1406_v19 = vadd.f32 %v1212_v32, %v501_v29  ;;  %v1438_v23 = vadd.f32 %v1292_v33, %v533_v30  ;;  %v1054_v34 = vpop.f32.mrf.mxu0  ;;  %v1134_v24 = vpop.f32.mrf.mxu1 }
 0x147   :  { %v1343_v35 = vadd.f32 %v1054_v34, %v438_v31  ;;  %v1375_v56 = vadd.f32 %v1134_v24, %v470_v18  ;;  %v507_v34 = vld [vmem:[#allocation2 + $0x2d0] sm:$0xff] }
 0x148   :  { %1534 = vst [vmem:[#allocation2 + $0x2a0] sm:$0xff] %v1406_v19  ;;  %v539_v24 = vld [vmem:[#allocation2 + $0x3d0] sm:$0xff] }
 0x149   :  { %1566 = vst [vmem:[#allocation2 + $0x3a0] sm:$0xff] %v1438_v23 }
 0x14a   :  { %1471 = vst [vmem:[#allocation2 + $0xa8] sm:$0xff] %v1343_v35  ;;  %v444_v35 = vld [vmem:[#allocation2 + $0xd8] sm:$0xff] }
 0x14b   :  { %1503 = vst [vmem:[#allocation2 + $0x1a8] sm:$0xff] %v1375_v56  ;;  %v476_v56 = vld [vmem:[#allocation2 + $0x1d8] sm:$0xff] }
 0x14d   :  { %v1214_v40 = vpop.f32.mrf.mxu2  ;;  %v1294_v41 = vpop.f32.mrf.mxu3 }
 0x14e   :  { %v1407_v42 = vadd.f32 %v1214_v40, %v502_v36  ;;  %v1439_v43 = vadd.f32 %v1294_v41, %v534_v37  ;;  %v1057_v44 = vpop.f32.mrf.mxu0  ;;  %v1137_v45 = vpop.f32.mrf.mxu1 }
 0x14f   :  { %v1344_v46 = vadd.f32 %v1057_v44, %v439_v38  ;;  %v1376_v47 = vadd.f32 %v1137_v45, %v471_v39  ;;  %v508_v44 = vld [vmem:[#allocation2 + $0x2d8] sm:$0xff] }
 0x150   :  { %1535 = vst [vmem:[#allocation2 + $0x2a8] sm:$0xff] %v1407_v42  ;;  %v540_v45 = vld [vmem:[#allocation2 + $0x3d8] sm:$0xff] }
 0x151   :  { %1567 = vst [vmem:[#allocation2 + $0x3a8] sm:$0xff] %v1439_v43 }
 0x152   :  { %1472 = vst [vmem:[#allocation2 + $0xb0] sm:$0xff] %v1344_v46  ;;  %v445_v46 = vld [vmem:[#allocation2 + $0xe0] sm:$0xff] }
 0x153   :  { %1504 = vst [vmem:[#allocation2 + $0x1b0] sm:$0xff] %v1376_v47  ;;  %v477_v47 = vld [vmem:[#allocation2 + $0x1e0] sm:$0xff] }
 0x155   :  { %v1217_v52 = vpop.f32.mrf.mxu2  ;;  %v1297_v53 = vpop.f32.mrf.mxu3 }
 0x156   :  { %v1408_v54 = vadd.f32 %v1217_v52, %v503_v48  ;;  %v1440_v55 = vadd.f32 %v1297_v53, %v535_v49  ;;  %v1059_v57 = vpop.f32.mrf.mxu0  ;;  %v1139_v58 = vpop.f32.mrf.mxu1 }
 0x157   :  { %v1345_v59 = vadd.f32 %v1059_v57, %v440_v50  ;;  %v1377_v60 = vadd.f32 %v1139_v58, %v472_v51  ;;  %v509_v57 = vld [vmem:[#allocation2 + $0x2e0] sm:$0xff] }
 0x158   :  { %1536 = vst [vmem:[#allocation2 + $0x2b0] sm:$0xff] %v1408_v54  ;;  %v541_v58 = vld [vmem:[#allocation2 + $0x3e0] sm:$0xff] }
 0x159   :  { %1568 = vst [vmem:[#allocation2 + $0x3b0] sm:$0xff] %v1440_v55 }
 0x15a   :  { %1473 = vst [vmem:[#allocation2 + $0xb8] sm:$0xff] %v1345_v59  ;;  %v446_v59 = vld [vmem:[#allocation2 + $0xe8] sm:$0xff] }
 0x15b   :  { %1505 = vst [vmem:[#allocation2 + $0x1b8] sm:$0xff] %v1377_v60  ;;  %v478_v60 = vld [vmem:[#allocation2 + $0x1e8] sm:$0xff] }
 0x15d   :  { %v1219_v1 = vpop.f32.mrf.mxu2  ;;  %v1299_v2 = vpop.f32.mrf.mxu3 }
 0x15e   :  { %v1409_v3 = vadd.f32 %v1219_v1, %v504_v61  ;;  %v1441_v4 = vadd.f32 %v1299_v2, %v536_v62  ;;  %v1062_v5 = vpop.f32.mrf.mxu0  ;;  %v1142_v6 = vpop.f32.mrf.mxu1 }
 0x15f   :  { %v1346_v7 = vadd.f32 %v1062_v5, %v441_v63  ;;  %v1378_v8 = vadd.f32 %v1142_v6, %v473_v0  ;;  %v510_v5 = vld [vmem:[#allocation2 + $0x2e8] sm:$0xff] }
 0x160   :  { %1537 = vst [vmem:[#allocation2 + $0x2b8] sm:$0xff] %v1409_v3  ;;  %v542_v6 = vld [vmem:[#allocation2 + $0x3e8] sm:$0xff] }
 0x161   :  { %1569 = vst [vmem:[#allocation2 + $0x3b8] sm:$0xff] %v1441_v4 }
 0x162   :  { %1474 = vst [vmem:[#allocation2 + $0xc0] sm:$0xff] %v1346_v7  ;;  %v447_v7 = vld [vmem:[#allocation2 + $0xf0] sm:$0xff] }
 0x163   :  { %1506 = vst [vmem:[#allocation2 + $0x1c0] sm:$0xff] %v1378_v8  ;;  %v479_v8 = vld [vmem:[#allocation2 + $0x1f0] sm:$0xff] }
 0x165   :  { %v1222_v14 = vpop.f32.mrf.mxu2  ;;  %v1302_v15 = vpop.f32.mrf.mxu3 }
 0x166   :  { %v1410_v16 = vadd.f32 %v1222_v14, %v505_v9  ;;  %v1442_v17 = vadd.f32 %v1302_v15, %v537_v11  ;;  %v1064_v20 = vpop.f32.mrf.mxu0  ;;  %v1144_v21 = vpop.f32.mrf.mxu1 }
 0x167   :  { %v1347_v22 = vadd.f32 %v1064_v20, %v442_v10  ;;  %v1379_v12 = vadd.f32 %v1144_v21, %v474_v13  ;;  %v511_v20 = vld [vmem:[#allocation2 + $0x2f0] sm:$0xff] }
 0x168   :  { %1538 = vst [vmem:[#allocation2 + $0x2c0] sm:$0xff] %v1410_v16  ;;  %v543_v21 = vld [vmem:[#allocation2 + $0x3f0] sm:$0xff] }
 0x169   :  { %1570 = vst [vmem:[#allocation2 + $0x3c0] sm:$0xff] %v1442_v17 }
 0x16a   :  { %1475 = vst [vmem:[#allocation2 + $0xc8] sm:$0xff] %v1347_v22  ;;  %v448_v22 = vld [vmem:[#allocation2 + $0xf8] sm:$0xff] }
 0x16b   :  { %1507 = vst [vmem:[#allocation2 + $0x1c8] sm:$0xff] %v1379_v12  ;;  %v480_v12 = vld [vmem:[#allocation2 + $0x1f8] sm:$0xff] }
 0x16d   :  { %v1224_v29 = vpop.f32.mrf.mxu2  ;;  %v1304_v30 = vpop.f32.mrf.mxu3 }
 0x16e   :  { %v1411_v31 = vadd.f32 %v1224_v29, %v506_v25  ;;  %v1443_v18 = vadd.f32 %v1304_v30, %v538_v26  ;;  %v1067_v32 = vpop.f32.mrf.mxu0  ;;  %v1147_v33 = vpop.f32.mrf.mxu1 }
 0x16f   :  { %v1348_v19 = vadd.f32 %v1067_v32, %v443_v27  ;;  %v1380_v23 = vadd.f32 %v1147_v33, %v475_v28  ;;  %v512_v32 = vld [vmem:[#allocation2 + $0x2f8] sm:$0xff] }
 0x170   :  { %1539 = vst [vmem:[#allocation2 + $0x2c8] sm:$0xff] %v1411_v31  ;;  %v544_v33 = vld [vmem:[#allocation2 + $0x3f8] sm:$0xff] }
 0x171   :  { %1571 = vst [vmem:[#allocation2 + $0x3c8] sm:$0xff] %v1443_v18 }
 0x172   :  { %1476 = vst [vmem:[#allocation2 + $0xd0] sm:$0xff] %v1348_v19 }
 0x173   :  { %1508 = vst [vmem:[#allocation2 + $0x1d0] sm:$0xff] %v1380_v23 }
 0x175   :  { %v1227_v36 = vpop.f32.mrf.mxu2  ;;  %v1307_v37 = vpop.f32.mrf.mxu3 }
 0x176   :  { %v1412_v38 = vadd.f32 %v1227_v36, %v507_v34  ;;  %v1444_v39 = vadd.f32 %v1307_v37, %v539_v24  ;;  %v1069_v40 = vpop.f32.mrf.mxu0  ;;  %v1149_v41 = vpop.f32.mrf.mxu1 }
 0x177   :  { %v1349_v42 = vadd.f32 %v1069_v40, %v444_v35  ;;  %v1381_v43 = vadd.f32 %v1149_v41, %v476_v56 }
 0x178   :  { %1540 = vst [vmem:[#allocation2 + $0x2d0] sm:$0xff] %v1412_v38 }
 0x179   :  { %1572 = vst [vmem:[#allocation2 + $0x3d0] sm:$0xff] %v1444_v39 }
 0x17a   :  { %1477 = vst [vmem:[#allocation2 + $0xd8] sm:$0xff] %v1349_v42 }
 0x17b   :  { %1509 = vst [vmem:[#allocation2 + $0x1d8] sm:$0xff] %v1381_v43 }
 0x17d   :  { %v1229_v48 = vpop.f32.mrf.mxu2  ;;  %v1309_v49 = vpop.f32.mrf.mxu3 }
 0x17e   :  { %v1413_v50 = vadd.f32 %v1229_v48, %v508_v44  ;;  %v1445_v51 = vadd.f32 %v1309_v49, %v540_v45  ;;  %v1072_v52 = vpop.f32.mrf.mxu0  ;;  %v1152_v53 = vpop.f32.mrf.mxu1 }
 0x17f   :  { %v1350_v54 = vadd.f32 %v1072_v52, %v445_v46  ;;  %v1382_v55 = vadd.f32 %v1152_v53, %v477_v47 }
 0x180   :  { %1541 = vst [vmem:[#allocation2 + $0x2d8] sm:$0xff] %v1413_v50 }
 0x181   :  { %1573 = vst [vmem:[#allocation2 + $0x3d8] sm:$0xff] %v1445_v51 }
 0x182   :  { %1478 = vst [vmem:[#allocation2 + $0xe0] sm:$0xff] %v1350_v54 }
 0x183   :  { %1510 = vst [vmem:[#allocation2 + $0x1e0] sm:$0xff] %v1382_v55 }
 0x185   :  { %v1232_v61 = vpop.f32.mrf.mxu2  ;;  %v1312_v62 = vpop.f32.mrf.mxu3 }
 0x186   :  { %v1414_v63 = vadd.f32 %v1232_v61, %v509_v57  ;;  %v1446_v0 = vadd.f32 %v1312_v62, %v541_v58  ;;  %v1074_v1 = vpop.f32.mrf.mxu0  ;;  %v1154_v2 = vpop.f32.mrf.mxu1 }
 0x187   :  { %v1351_v3 = vadd.f32 %v1074_v1, %v446_v59  ;;  %v1383_v4 = vadd.f32 %v1154_v2, %v478_v60 }
 0x188   :  { %1542 = vst [vmem:[#allocation2 + $0x2e0] sm:$0xff] %v1414_v63 }
 0x189   :  { %1574 = vst [vmem:[#allocation2 + $0x3e0] sm:$0xff] %v1446_v0 }
 0x18a   :  { %1479 = vst [vmem:[#allocation2 + $0xe8] sm:$0xff] %v1351_v3 }
 0x18b   :  { %1511 = vst [vmem:[#allocation2 + $0x1e8] sm:$0xff] %v1383_v4 }
 0x18d   :  { %v1234_v9 = vpop.f32.mrf.mxu2  ;;  %v1314_v11 = vpop.f32.mrf.mxu3 }
 0x18e   :  { %v1415_v10 = vadd.f32 %v1234_v9, %v510_v5  ;;  %v1447_v13 = vadd.f32 %v1314_v11, %v542_v6  ;;  %v1077_v14 = vpop.f32.mrf.mxu0  ;;  %v1157_v15 = vpop.f32.mrf.mxu1 }
 0x18f   :  { %v1352_v16 = vadd.f32 %v1077_v14, %v447_v7  ;;  %v1384_v17 = vadd.f32 %v1157_v15, %v479_v8 }
 0x190   :  { %1543 = vst [vmem:[#allocation2 + $0x2e8] sm:$0xff] %v1415_v10 }
 0x191   :  { %1575 = vst [vmem:[#allocation2 + $0x3e8] sm:$0xff] %v1447_v13 }
 0x192   :  { %1480 = vst [vmem:[#allocation2 + $0xf0] sm:$0xff] %v1352_v16 }
 0x193   :  { %1512 = vst [vmem:[#allocation2 + $0x1f0] sm:$0xff] %v1384_v17 }
 0x195   :  { %v1237_v25 = vpop.f32.mrf.mxu2  ;;  %v1317_v26 = vpop.f32.mrf.mxu3 }
 0x196   :  { %v1416_v27 = vadd.f32 %v1237_v25, %v511_v20  ;;  %v1448_v28 = vadd.f32 %v1317_v26, %v543_v21  ;;  %v1079_v29 = vpop.f32.mrf.mxu0  ;;  %v1159_v30 = vpop.f32.mrf.mxu1 }
 0x197   :  { %v1353_v31 = vadd.f32 %v1079_v29, %v448_v22  ;;  %v1385_v18 = vadd.f32 %v1159_v30, %v480_v12 }
 0x198   :  { %1544 = vst [vmem:[#allocation2 + $0x2f0] sm:$0xff] %v1416_v27 }
 0x199   :  { %1576 = vst [vmem:[#allocation2 + $0x3f0] sm:$0xff] %v1448_v28 }
 0x19a   :  { %1481 = vst [vmem:[#allocation2 + $0xf8] sm:$0xff] %v1353_v31 }
 0x19b   :  { %1513 = vst [vmem:[#allocation2 + $0x1f8] sm:$0xff] %v1385_v18 }
 0x19d   :  { %v1239_v19 = vpop.f32.mrf.mxu2  ;;  %v1319_v23 = vpop.f32.mrf.mxu3 }
 0x19e   :  { %v1417_v34 = vadd.f32 %v1239_v19, %v512_v32  ;;  %v1449_v24 = vadd.f32 %v1319_v23, %v544_v33 }
 0x1a0   :  { %1545 = vst [vmem:[#allocation2 + $0x2f8] sm:$0xff] %v1417_v34 }
 0x1a1   :  { %1577 = vst [vmem:[#allocation2 + $0x3f8] sm:$0xff] %v1449_v24 }
 0x1a2   :  { %1590 = dma.vmem_to_hbm [thread:$0]  %s1583_s29, 16384, %s1585_s4, [#allocation3], %s1692_s5, %s1692_s5, %s1693_s6  }
 0x1a3   :  { %1689 = dma.done.wait [#allocation3], 16384  }
 0x1a4   :  { %1690 = vsyncadd [#allocation3], 4294950912 }
 0x1a5   :  { %1595 = vsyncpa [#allocation3], 1 }

</bundles_post_ra>
